<compile_context>
chip_gen: v5e
topology: v5e:2x2
jax: 0.10.0
libtpu: 0.0.40
codegen_flags: <defaults>
</compile_context>

<pallas_src>
import functools

import jax
import jax.numpy as jnp
import numpy as np
from jax.experimental import pallas as pl
from jax.experimental.pallas import tpu as pltpu


def _mc_loss_block_kernel(pca_ref, samples_ref, img_ref, noise_ref,
                          avg_ref, eig_ref, gram_ref,
                          loss_out_ref, mc_out_ref,
                          *, lamb, num_eig, dim, num_sample, block_b):
    f32 = jnp.float32
    del num_sample  # shape is carried by the refs

    # Batched projections for the whole image tile (TB rows on the MXU).
    x = img_ref[...] - avg_ref[...]                       # (TB, D)
    y = noise_ref[...] - avg_ref[...]                     # (TB, D)
    eig = eig_ref[...]                                    # (D, K)
    b = jnp.dot(x, eig, preferred_element_type=f32)       # (TB, K) = E^T x
    c = jnp.dot(y, eig, preferred_element_type=f32)       # (TB, K) = E^T y
    xnorm = jnp.sum(x * x, axis=1, keepdims=True)         # (TB, 1) = ||x||^2
    gram = gram_ref[...]                                  # (K, K)  = E^T E
    pca = pca_ref[...]                                    # (TB, K)

    inv_dim = 1.0 / float(dim)
    inv_k = 1.0 / float(num_eig)

    loss_sum = jnp.zeros((1, 1), f32)
    mc_sum = jnp.zeros((1, 1), f32)

    # Per-image MC-sample work, fully in K-space (2-D ops only).  block_b <= 8,
    # statically unrolled.
    for t in range(block_b):
        s_t = samples_ref[t]                              # (S, K) {0,1}
        c_t = c[t:t + 1, :]                               # (1, K)
        b_t = b[t:t + 1, :]                               # (1, K)
        p_t = pca[t:t + 1, :]                             # (1, K)
        xn_t = xnorm[t:t + 1, :]                          # (1, 1)

        w = s_t * c_t                                     # (S, K) masked coeffs
        q = jnp.dot(w, gram, preferred_element_type=f32)  # (S, K)
        quad = jnp.sum(q * w, axis=1, keepdims=True)      # (S, 1) = ||E w||^2
        cross = jnp.sum(w * b_t, axis=1, keepdims=True)   # (S, 1) = (E w)·x
        recon_loss = (quad - 2.0 * cross + xn_t) * inv_dim
        regular = jnp.sum(s_t, axis=1, keepdims=True)     # (S, 1)
        loss = recon_loss + lamb * regular                # (S, 1)

        # PyTorch: if no eigenvector is selected in any sample, Loss returns 0.
        any_on = jnp.sum(regular, axis=0, keepdims=True)  # (1, 1)
        loss = jnp.where(any_on > 0.0, loss, jnp.zeros_like(loss))

        # LogLikehood: mean of log|1 - m - p| over eigen dims, plus constant 1.
        prob = jnp.abs(1.0 - s_t - p_t)                   # (S, K)
        lik = jnp.sum(jnp.log(prob), axis=1, keepdims=True) * inv_k + 1.0

        loss_sum = loss_sum + jnp.sum(loss, keepdims=True)
        mc_sum = mc_sum + jnp.sum(loss * lik, keepdims=True)

    # Lane-dense (1, 128) partial-sum writes; final reduce/divide is in JAX.
    loss_out_ref[...] = jnp.broadcast_to(loss_sum, loss_out_ref.shape)
    mc_out_ref[...] = jnp.broadcast_to(mc_sum, mc_out_ref.shape)


def mc_loss_mean_plus_cons(pca_act, samples, images, images_noise,
                           avg_face, eig_vec, lamb):
    """Returns (mc_loss, loss_mean) as float32 scalars."""
    B = images.shape[0]
    D, K = eig_vec.shape
    S = samples.shape[1]

    img_flat = jnp.reshape(images, (B, D)).astype(jnp.float32)
    noise_flat = jnp.reshape(images_noise, (B, D)).astype(jnp.float32)
    avg2 = jnp.reshape(avg_face, (1, D)).astype(jnp.float32)
    pca_act = pca_act.astype(jnp.float32)
    samples = samples.astype(jnp.float32)
    eig_vec = eig_vec.astype(jnp.float32)

    # One-time K x K Gram matrix (grid-invariant kernel input).
    gram = jnp.dot(eig_vec.T, eig_vec, preferred_element_type=jnp.float32)

    # Batch tile: whole batch for small B, 8 otherwise (sublane-aligned blocks).
    TB = B if B <= 8 else 8
    B_pad = ((B + TB - 1) // TB) * TB
    if B_pad != B:
        pad = B_pad - B
        _pad = lambda a: jnp.pad(a, ((0, pad),) + ((0, 0),) * (a.ndim - 1))
        # Padded rows have all-zero samples & pca -> contribute exactly 0.
        pca_act, samples, img_flat, noise_flat = (
            _pad(pca_act), _pad(samples), _pad(img_flat), _pad(noise_flat))
    nblk = B_pad // TB

    kernel = functools.partial(
        _mc_loss_block_kernel, lamb=float(lamb), num_eig=K, dim=D,
        num_sample=S, block_b=TB)

    def _run(single_buffer):
        if single_buffer:
            # Grid-invariant operands: no pipelining needed -> single buffer.
            inv_spec = lambda shape: pl.BlockSpec(
                shape, lambda i: (0,) * len(shape),
                pipeline_mode=pl.Buffered(1))
        else:
            inv_spec = lambda shape: pl.BlockSpec(
                shape, lambda i: (0,) * len(shape))

        grid_spec = pltpu.PrefetchScalarGridSpec(
            num_scalar_prefetch=0,
            grid=(nblk,),
            in_specs=[
                pl.BlockSpec((TB, K), lambda i: (i, 0)),        # pca_act
                pl.BlockSpec((TB, S, K), lambda i: (i, 0, 0)),  # samples
                pl.BlockSpec((TB, D), lambda i: (i, 0)),        # images
                pl.BlockSpec((TB, D), lambda i: (i, 0)),        # images_noise
                inv_spec((1, D)),                               # avg_face
                inv_spec((D, K)),                               # eig_vec
                inv_spec((K, K)),                               # gram = E^T E
            ],
            out_specs=(
                pl.BlockSpec((1, 128), lambda i: (i, 0)),       # sum(loss) / block
                pl.BlockSpec((1, 128), lambda i: (i, 0)),       # sum(loss*lik) / block
            ),
        )
        return pl.pallas_call(
            kernel,
            out_shape=(jax.ShapeDtypeStruct((nblk, 128), jnp.float32),
                       jax.ShapeDtypeStruct((nblk, 128), jnp.float32)),
            grid_spec=grid_spec,
            compiler_params=pltpu.CompilerParams(
                dimension_semantics=("parallel",),   # per-block outputs -> parallel
                vmem_limit_bytes=48 * 1024 * 1024),
        )(pca_act, samples, img_flat, noise_flat, avg2, eig_vec, gram)

    try:
        loss_part, mc_part = _run(single_buffer=True)
    except Exception:
        # pl.Buffered(1) not supported by this jax/backend combo -> default buffering.
        loss_part, mc_part = _run(single_buffer=False)

    loss_mean = jnp.sum(loss_part[:, 0]) / float(S * B)   # losses.mean()
    mc_loss = jnp.sum(mc_part[:, 0]) / float(B)           # (losses*lik).sum(0).mean()
    return mc_loss, loss_mean


def _reference(pca_act, samples, images, images_noise, avg_face, eig_vec, lamb):
    """Pure-JAX reference mirroring the PyTorch forward (direct recon path)."""
    B = images.shape[0]
    D, K = eig_vec.shape
    x = images.reshape(B, D) - avg_face[None, :]
    y = images_noise.reshape(B, D) - avg_face[None, :]
    c = y @ eig_vec                                          # (B, K)
    masked = samples * c[:, None, :]                         # (B, S, K)
    recon = jnp.einsum('bsk,dk->bsd', masked, eig_vec)       # (B, S, D)
    recon_loss = jnp.mean((recon - x[:, None, :]) ** 2, axis=2)  # (B, S)
    regular = samples.sum(axis=2)
    loss = recon_loss + lamb * regular
    any_on = samples.sum(axis=(1, 2)) > 0
    loss = jnp.where(any_on[:, None], loss, 0.0)
    prob = jnp.abs(1.0 - samples - pca_act[:, None, :])
    lik = jnp.log(prob).sum(axis=2) / K + 1.0
    losses = loss.T        # (S, B)
    likehoods = lik.T      # (S, B)
    loss_mean = losses.mean()
    mc_loss = (losses * likehoods).sum(0).mean()
    return mc_loss, loss_mean


if __name__ == "__main__":
    B, C, H, W = 2, 1, 16, 16
    D = H * W                   # 256
    K = 32                      # number of eigenvectors kept
    S = 30                      # num_sample
    lamb = 0.01

    key = jax.random.PRNGKey(0)
    k1, k2, k3, k4, k5, k6 = jax.random.split(key, 6)

    # Deterministic synthetic "eigen_data" (stands in for torch.load(eigen_path)).
    eig_vec = jax.random.normal(k1, (D, K), dtype=jnp.float32) / jnp.sqrt(D)
    avg_face = jax.random.uniform(k2, (D,), dtype=jnp.float32)

    # Module inputs.
    pca_act = jax.random.uniform(k3, (B, K), minval=0.05, maxval=0.6,
                                 dtype=jnp.float32)
    images = jax.random.uniform(k4, (B, C, H, W), dtype=jnp.float32)
    images_noise = images + 0.05 * jax.random.normal(k5, (B, C, H, W),
                                                     dtype=jnp.float32)

    # TODO(synk): MCSampling's host-side torch.rand draw is reproduced here
    # with jax.random in the harness; the sampling itself is not the hot path.
    uni = jax.random.uniform(k6, (B, S, K), dtype=jnp.float32)
    samples = (pca_act[:, None, :] > uni).astype(jnp.float32)   # (B, S, K)

    mc_loss, loss_mean = mc_loss_mean_plus_cons(
        pca_act, samples, images, images_noise, avg_face, eig_vec, lamb)
    jax.block_until_ready((mc_loss, loss_mean))

    ref_mc, ref_mean = _reference(
        pca_act, samples, images, images_noise, avg_face, eig_vec, lamb)
    jax.block_until_ready((ref_mc, ref_mean))

    np.testing.assert_allclose(np.asarray(mc_loss), np.asarray(ref_mc),
                               rtol=1e-2, atol=1e-2)
    np.testing.assert_allclose(np.asarray(loss_mean), np.asarray(ref_mean),
                               rtol=1e-2, atol=1e-2)
    assert np.isfinite(np.asarray(mc_loss)) and np.isfinite(np.asarray(loss_mean))

    print("KERNEL_OK")
</pallas_src>

<mosaic_0001>
module attributes {stable_mosaic.version = 11 : i64} {
  func.func @_mc_loss_block_kernel(%arg0: i32, %arg1: memref<2x32xf32, #tpu.memory_space<vmem>>, %arg2: memref<2x30x32xf32, #tpu.memory_space<vmem>>, %arg3: memref<2x256xf32, #tpu.memory_space<vmem>>, %arg4: memref<2x256xf32, #tpu.memory_space<vmem>>, %arg5: memref<1x256xf32, #tpu.memory_space<vmem>>, %arg6: memref<256x32xf32, #tpu.memory_space<vmem>>, %arg7: memref<32x32xf32, #tpu.memory_space<vmem>>, %arg8: memref<1x128xf32, #tpu.memory_space<vmem>>, %arg9: memref<1x128xf32, #tpu.memory_space<vmem>>) attributes {dimension_semantics = [#tpu.dimension_semantics<parallel>], iteration_bounds = array<i64: 1>, scalar_prefetch = 0 : i64, scratch_operands = 0 : i64, tpu.core_type = #tpu.core_type<tc>, window_params = [{transform_indices = @transform_0, window_bounds = array<i64: 2, 32>}, {transform_indices = @transform_1, window_bounds = array<i64: 2, 30, 32>}, {transform_indices = @transform_2, window_bounds = array<i64: 2, 256>}, {transform_indices = @transform_3, window_bounds = array<i64: 2, 256>}, {pipeline_mode = #tpu.pipeline_mode<synchronous>, transform_indices = @transform_4, window_bounds = array<i64: 1, 256>}, {pipeline_mode = #tpu.pipeline_mode<synchronous>, transform_indices = @transform_5, window_bounds = array<i64: 256, 32>}, {pipeline_mode = #tpu.pipeline_mode<synchronous>, transform_indices = @transform_6, window_bounds = array<i64: 32, 32>}, {transform_indices = @transform_7, window_bounds = array<i64: 1, 128>}, {transform_indices = @transform_8, window_bounds = array<i64: 1, 128>}]} {
    %c0 = arith.constant 0 : index
    %c0_0 = arith.constant 0 : index
    %0 = vector.load %arg3[%c0, %c0_0] : memref<2x256xf32, #tpu.memory_space<vmem>>, vector<2x256xf32>
    %c0_1 = arith.constant 0 : index
    %c0_2 = arith.constant 0 : index
    %1 = vector.load %arg5[%c0_1, %c0_2] : memref<1x256xf32, #tpu.memory_space<vmem>>, vector<1x256xf32>
    %2 = vector.broadcast %1 : vector<1x256xf32> to vector<2x256xf32>
    %3 = arith.subf %0, %2 : vector<2x256xf32>
    %c0_3 = arith.constant 0 : index
    %c0_4 = arith.constant 0 : index
    %4 = vector.load %arg4[%c0_3, %c0_4] : memref<2x256xf32, #tpu.memory_space<vmem>>, vector<2x256xf32>
    %c0_5 = arith.constant 0 : index
    %c0_6 = arith.constant 0 : index
    %5 = vector.load %arg5[%c0_5, %c0_6] : memref<1x256xf32, #tpu.memory_space<vmem>>, vector<1x256xf32>
    %6 = vector.broadcast %5 : vector<1x256xf32> to vector<2x256xf32>
    %7 = arith.subf %4, %6 : vector<2x256xf32>
    %c0_7 = arith.constant 0 : index
    %c0_8 = arith.constant 0 : index
    %8 = vector.load %arg6[%c0_7, %c0_8] : memref<256x32xf32, #tpu.memory_space<vmem>>, vector<256x32xf32>
    %cst = arith.constant dense<0.000000e+00> : vector<2x32xf32>
    %9 = tpu.matmul %3, %8, %cst {dimension_numbers = #tpu.dot_dimension_numbers<[1], [0], [0], [1], [0, 0, 1, 1], [], []>} : vector<2x256xf32>, vector<256x32xf32>, vector<2x32xf32> -> vector<2x32xf32>
    %cst_9 = arith.constant dense<0.000000e+00> : vector<2x32xf32>
    %10 = tpu.matmul %7, %8, %cst_9 {dimension_numbers = #tpu.dot_dimension_numbers<[1], [0], [0], [1], [0, 0, 1, 1], [], []>} : vector<2x256xf32>, vector<256x32xf32>, vector<2x32xf32> -> vector<2x32xf32>
    %11 = arith.mulf %3, %3 : vector<2x256xf32>
    %cst_10 = arith.constant dense<0.000000e+00> : vector<2xf32>
    %12 = vector.multi_reduction <add>, %11, %cst_10 [1] : vector<2x256xf32> to vector<2xf32>
    %13 = vector.shape_cast %12 : vector<2xf32> to vector<2x1xf32>
    %c0_11 = arith.constant 0 : index
    %c0_12 = arith.constant 0 : index
    %14 = vector.load %arg7[%c0_11, %c0_12] : memref<32x32xf32, #tpu.memory_space<vmem>>, vector<32x32xf32>
    %c0_13 = arith.constant 0 : index
    %c0_14 = arith.constant 0 : index
    %15 = vector.load %arg1[%c0_13, %c0_14] : memref<2x32xf32, #tpu.memory_space<vmem>>, vector<2x32xf32>
    %cst_15 = arith.constant 0.000000e+00 : f32
    %16 = vector.broadcast %cst_15 : f32 to vector<1x1xf32>
    %cst_16 = arith.constant 0.000000e+00 : f32
    %17 = vector.broadcast %cst_16 : f32 to vector<1x1xf32>
    %c0_17 = arith.constant 0 : index
    %c0_18 = arith.constant 0 : index
    %c0_19 = arith.constant 0 : index
    %18 = vector.load %arg2[%c0_17, %c0_18, %c0_19] : memref<2x30x32xf32, #tpu.memory_space<vmem>>, vector<1x30x32xf32>
    %19 = vector.shape_cast %18 : vector<1x30x32xf32> to vector<30x32xf32>
    %20 = vector.extract_strided_slice %10 {offsets = [0, 0], sizes = [1, 32], strides = [1, 1]} : vector<2x32xf32> to vector<1x32xf32>
    %21 = vector.extract_strided_slice %9 {offsets = [0, 0], sizes = [1, 32], strides = [1, 1]} : vector<2x32xf32> to vector<1x32xf32>
    %22 = vector.extract_strided_slice %15 {offsets = [0, 0], sizes = [1, 32], strides = [1, 1]} : vector<2x32xf32> to vector<1x32xf32>
    %23 = vector.extract_strided_slice %13 {offsets = [0, 0], sizes = [1, 1], strides = [1, 1]} : vector<2x1xf32> to vector<1x1xf32>
    %24 = vector.broadcast %20 : vector<1x32xf32> to vector<30x32xf32>
    %25 = arith.mulf %19, %24 : vector<30x32xf32>
    %cst_20 = arith.constant dense<0.000000e+00> : vector<30x32xf32>
    %26 = tpu.matmul %25, %14, %cst_20 {dimension_numbers = #tpu.dot_dimension_numbers<[1], [0], [0], [1], [0, 0, 1, 1], [], []>} : vector<30x32xf32>, vector<32x32xf32>, vector<30x32xf32> -> vector<30x32xf32>
    %27 = arith.mulf %26, %25 : vector<30x32xf32>
    %cst_21 = arith.constant dense<0.000000e+00> : vector<30xf32>
    %28 = vector.multi_reduction <add>, %27, %cst_21 [1] : vector<30x32xf32> to vector<30xf32>
    %29 = vector.shape_cast %28 : vector<30xf32> to vector<30x1xf32>
    %30 = vector.broadcast %21 : vector<1x32xf32> to vector<30x32xf32>
    %31 = arith.mulf %25, %30 : vector<30x32xf32>
    %cst_22 = arith.constant dense<0.000000e+00> : vector<30xf32>
    %32 = vector.multi_reduction <add>, %31, %cst_22 [1] : vector<30x32xf32> to vector<30xf32>
    %33 = vector.shape_cast %32 : vector<30xf32> to vector<30x1xf32>
    %cst_23 = arith.constant 2.000000e+00 : f32
    %34 = vector.broadcast %cst_23 : f32 to vector<30x1xf32>
    %35 = arith.mulf %34, %33 : vector<30x1xf32>
    %36 = arith.subf %29, %35 : vector<30x1xf32>
    %37 = vector.broadcast %23 : vector<1x1xf32> to vector<30x1xf32>
    %38 = arith.addf %36, %37 : vector<30x1xf32>
    %cst_24 = arith.constant 3.906250e-03 : f32
    %39 = vector.broadcast %cst_24 : f32 to vector<30x1xf32>
    %40 = arith.mulf %38, %39 : vector<30x1xf32>
    %cst_25 = arith.constant dense<0.000000e+00> : vector<30xf32>
    %41 = vector.multi_reduction <add>, %19, %cst_25 [1] : vector<30x32xf32> to vector<30xf32>
    %42 = vector.shape_cast %41 : vector<30xf32> to vector<30x1xf32>
    %cst_26 = arith.constant 0.00999999977 : f32
    %43 = vector.broadcast %cst_26 : f32 to vector<30x1xf32>
    %44 = arith.mulf %43, %42 : vector<30x1xf32>
    %45 = arith.addf %40, %44 : vector<30x1xf32>
    %cst_27 = arith.constant dense<0.000000e+00> : vector<1xf32>
    %46 = vector.multi_reduction <add>, %42, %cst_27 [0] : vector<30x1xf32> to vector<1xf32>
    %47 = vector.shape_cast %46 : vector<1xf32> to vector<1x1xf32>
    %cst_28 = arith.constant 0.000000e+00 : f32
    %48 = vector.broadcast %cst_28 : f32 to vector<1x1xf32>
    %49 = arith.cmpf ogt, %47, %48 : vector<1x1xf32>
    %cst_29 = arith.constant 0.000000e+00 : f32
    %50 = vector.broadcast %cst_29 : f32 to vector<30x1xf32>
    %51 = vector.shape_cast %49 : vector<1x1xi1> to vector<1x1xi1>
    %52 = vector.broadcast %51 : vector<1x1xi1> to vector<30x1xi1>
    %53 = arith.select %52, %45, %50 : vector<30x1xi1>, vector<30x1xf32>
    %cst_30 = arith.constant 1.000000e+00 : f32
    %54 = vector.broadcast %cst_30 : f32 to vector<30x32xf32>
    %55 = arith.subf %54, %19 : vector<30x32xf32>
    %56 = vector.broadcast %22 : vector<1x32xf32> to vector<30x32xf32>
    %57 = arith.subf %55, %56 : vector<30x32xf32>
    %58 = math.absf %57 : vector<30x32xf32>
    %59 = math.log %58 : vector<30x32xf32>
    %cst_31 = arith.constant dense<0.000000e+00> : vector<30xf32>
    %60 = vector.multi_reduction <add>, %59, %cst_31 [1] : vector<30x32xf32> to vector<30xf32>
    %61 = vector.shape_cast %60 : vector<30xf32> to vector<30x1xf32>
    %cst_32 = arith.constant 3.125000e-02 : f32
    %62 = vector.broadcast %cst_32 : f32 to vector<30x1xf32>
    %63 = arith.mulf %61, %62 : vector<30x1xf32>
    %cst_33 = arith.constant 1.000000e+00 : f32
    %64 = vector.broadcast %cst_33 : f32 to vector<30x1xf32>
    %65 = arith.addf %63, %64 : vector<30x1xf32>
    %66 = vector.shape_cast %53 : vector<30x1xf32> to vector<1x30x1xf32>
    %cst_34 = arith.constant dense<0.000000e+00> : vector<1xf32>
    %67 = vector.multi_reduction <add>, %66, %cst_34 [1, 2] : vector<1x30x1xf32> to vector<1xf32>
    %68 = vector.shape_cast %67 : vector<1xf32> to vector<1x1x1xf32>
    %69 = vector.extract %68[0, 0, 0] : f32 from vector<1x1x1xf32>
    %70 = vector.broadcast %69 : f32 to vector<1x1xf32>
    %71 = arith.addf %16, %70 : vector<1x1xf32>
    %72 = arith.mulf %53, %65 : vector<30x1xf32>
    %73 = vector.shape_cast %72 : vector<30x1xf32> to vector<1x30x1xf32>
    %cst_35 = arith.constant dense<0.000000e+00> : vector<1xf32>
    %74 = vector.multi_reduction <add>, %73, %cst_35 [1, 2] : vector<1x30x1xf32> to vector<1xf32>
    %75 = vector.shape_cast %74 : vector<1xf32> to vector<1x1x1xf32>
    %76 = vector.extract %75[0, 0, 0] : f32 from vector<1x1x1xf32>
    %77 = vector.broadcast %76 : f32 to vector<1x1xf32>
    %78 = arith.addf %17, %77 : vector<1x1xf32>
    %c1 = arith.constant 1 : index
    %c0_36 = arith.constant 0 : index
    %c0_37 = arith.constant 0 : index
    %79 = vector.load %arg2[%c1, %c0_36, %c0_37] : memref<2x30x32xf32, #tpu.memory_space<vmem>>, vector<1x30x32xf32>
    %80 = vector.shape_cast %79 : vector<1x30x32xf32> to vector<30x32xf32>
    %81 = vector.extract_strided_slice %10 {offsets = [1, 0], sizes = [1, 32], strides = [1, 1]} : vector<2x32xf32> to vector<1x32xf32>
    %82 = vector.extract_strided_slice %9 {offsets = [1, 0], sizes = [1, 32], strides = [1, 1]} : vector<2x32xf32> to vector<1x32xf32>
    %83 = vector.extract_strided_slice %15 {offsets = [1, 0], sizes = [1, 32], strides = [1, 1]} : vector<2x32xf32> to vector<1x32xf32>
    %84 = vector.extract_strided_slice %13 {offsets = [1, 0], sizes = [1, 1], strides = [1, 1]} : vector<2x1xf32> to vector<1x1xf32>
    %85 = vector.broadcast %81 : vector<1x32xf32> to vector<30x32xf32>
    %86 = arith.mulf %80, %85 : vector<30x32xf32>
    %cst_38 = arith.constant dense<0.000000e+00> : vector<30x32xf32>
    %87 = tpu.matmul %86, %14, %cst_38 {dimension_numbers = #tpu.dot_dimension_numbers<[1], [0], [0], [1], [0, 0, 1, 1], [], []>} : vector<30x32xf32>, vector<32x32xf32>, vector<30x32xf32> -> vector<30x32xf32>
    %88 = arith.mulf %87, %86 : vector<30x32xf32>
    %cst_39 = arith.constant dense<0.000000e+00> : vector<30xf32>
    %89 = vector.multi_reduction <add>, %88, %cst_39 [1] : vector<30x32xf32> to vector<30xf32>
    %90 = vector.shape_cast %89 : vector<30xf32> to vector<30x1xf32>
    %91 = vector.broadcast %82 : vector<1x32xf32> to vector<30x32xf32>
    %92 = arith.mulf %86, %91 : vector<30x32xf32>
    %cst_40 = arith.constant dense<0.000000e+00> : vector<30xf32>
    %93 = vector.multi_reduction <add>, %92, %cst_40 [1] : vector<30x32xf32> to vector<30xf32>
    %94 = vector.shape_cast %93 : vector<30xf32> to vector<30x1xf32>
    %cst_41 = arith.constant 2.000000e+00 : f32
    %95 = vector.broadcast %cst_41 : f32 to vector<30x1xf32>
    %96 = arith.mulf %95, %94 : vector<30x1xf32>
    %97 = arith.subf %90, %96 : vector<30x1xf32>
    %98 = vector.broadcast %84 : vector<1x1xf32> to vector<30x1xf32>
    %99 = arith.addf %97, %98 : vector<30x1xf32>
    %cst_42 = arith.constant 3.906250e-03 : f32
    %100 = vector.broadcast %cst_42 : f32 to vector<30x1xf32>
    %101 = arith.mulf %99, %100 : vector<30x1xf32>
    %cst_43 = arith.constant dense<0.000000e+00> : vector<30xf32>
    %102 = vector.multi_reduction <add>, %80, %cst_43 [1] : vector<30x32xf32> to vector<30xf32>
    %103 = vector.shape_cast %102 : vector<30xf32> to vector<30x1xf32>
    %cst_44 = arith.constant 0.00999999977 : f32
    %104 = vector.broadcast %cst_44 : f32 to vector<30x1xf32>
    %105 = arith.mulf %104, %103 : vector<30x1xf32>
    %106 = arith.addf %101, %105 : vector<30x1xf32>
    %cst_45 = arith.constant dense<0.000000e+00> : vector<1xf32>
    %107 = vector.multi_reduction <add>, %103, %cst_45 [0] : vector<30x1xf32> to vector<1xf32>
    %108 = vector.shape_cast %107 : vector<1xf32> to vector<1x1xf32>
    %cst_46 = arith.constant 0.000000e+00 : f32
    %109 = vector.broadcast %cst_46 : f32 to vector<1x1xf32>
    %110 = arith.cmpf ogt, %108, %109 : vector<1x1xf32>
    %cst_47 = arith.constant 0.000000e+00 : f32
    %111 = vector.broadcast %cst_47 : f32 to vector<30x1xf32>
    %112 = vector.shape_cast %110 : vector<1x1xi1> to vector<1x1xi1>
    %113 = vector.broadcast %112 : vector<1x1xi1> to vector<30x1xi1>
    %114 = arith.select %113, %106, %111 : vector<30x1xi1>, vector<30x1xf32>
    %cst_48 = arith.constant 1.000000e+00 : f32
    %115 = vector.broadcast %cst_48 : f32 to vector<30x32xf32>
    %116 = arith.subf %115, %80 : vector<30x32xf32>
    %117 = vector.broadcast %83 : vector<1x32xf32> to vector<30x32xf32>
    %118 = arith.subf %116, %117 : vector<30x32xf32>
    %119 = math.absf %118 : vector<30x32xf32>
    %120 = math.log %119 : vector<30x32xf32>
    %cst_49 = arith.constant dense<0.000000e+00> : vector<30xf32>
    %121 = vector.multi_reduction <add>, %120, %cst_49 [1] : vector<30x32xf32> to vector<30xf32>
    %122 = vector.shape_cast %121 : vector<30xf32> to vector<30x1xf32>
    %cst_50 = arith.constant 3.125000e-02 : f32
    %123 = vector.broadcast %cst_50 : f32 to vector<30x1xf32>
    %124 = arith.mulf %122, %123 : vector<30x1xf32>
    %cst_51 = arith.constant 1.000000e+00 : f32
    %125 = vector.broadcast %cst_51 : f32 to vector<30x1xf32>
    %126 = arith.addf %124, %125 : vector<30x1xf32>
    %127 = vector.shape_cast %114 : vector<30x1xf32> to vector<1x30x1xf32>
    %cst_52 = arith.constant dense<0.000000e+00> : vector<1xf32>
    %128 = vector.multi_reduction <add>, %127, %cst_52 [1, 2] : vector<1x30x1xf32> to vector<1xf32>
    %129 = vector.shape_cast %128 : vector<1xf32> to vector<1x1x1xf32>
    %130 = vector.extract %129[0, 0, 0] : f32 from vector<1x1x1xf32>
    %131 = vector.broadcast %130 : f32 to vector<1x1xf32>
    %132 = arith.addf %71, %131 : vector<1x1xf32>
    %133 = arith.mulf %114, %126 : vector<30x1xf32>
    %134 = vector.shape_cast %133 : vector<30x1xf32> to vector<1x30x1xf32>
    %cst_53 = arith.constant dense<0.000000e+00> : vector<1xf32>
    %135 = vector.multi_reduction <add>, %134, %cst_53 [1, 2] : vector<1x30x1xf32> to vector<1xf32>
    %136 = vector.shape_cast %135 : vector<1xf32> to vector<1x1x1xf32>
    %137 = vector.extract %136[0, 0, 0] : f32 from vector<1x1x1xf32>
    %138 = vector.broadcast %137 : f32 to vector<1x1xf32>
    %139 = arith.addf %78, %138 : vector<1x1xf32>
    %140 = vector.shape_cast %132 : vector<1x1xf32> to vector<1x1xf32>
    %141 = vector.broadcast %140 : vector<1x1xf32> to vector<1x128xf32>
    %c0_54 = arith.constant 0 : index
    %c0_55 = arith.constant 0 : index
    %142 = vector.load %arg8[%c0_54, %c0_55] : memref<1x128xf32, #tpu.memory_space<vmem>>, vector<1x128xf32>
    tpu.vector_store %arg8[%c0_54, %c0_55], %141 {strides = array<i32>} : memref<1x128xf32, #tpu.memory_space<vmem>>, vector<1x128xf32>,
    %143 = vector.shape_cast %139 : vector<1x1xf32> to vector<1x1xf32>
    %144 = vector.broadcast %143 : vector<1x1xf32> to vector<1x128xf32>
    %c0_56 = arith.constant 0 : index
    %c0_57 = arith.constant 0 : index
    %145 = vector.load %arg9[%c0_56, %c0_57] : memref<1x128xf32, #tpu.memory_space<vmem>>, vector<1x128xf32>
    tpu.vector_store %arg9[%c0_56, %c0_57], %144 {strides = array<i32>} : memref<1x128xf32, #tpu.memory_space<vmem>>, vector<1x128xf32>,
    return
  }
  func.func @transform_0(%arg0: i32) -> (i32, i32) {
    %c0_i32 = arith.constant 0 : i32
    %c0_i32_0 = arith.constant 0 : i32
    return %arg0, %c0_i32 : i32, i32
  }
  func.func @transform_1(%arg0: i32) -> (i32, i32, i32) {
    %c0_i32 = arith.constant 0 : i32
    %c0_i32_0 = arith.constant 0 : i32
    %c0_i32_1 = arith.constant 0 : i32
    return %arg0, %c0_i32, %c0_i32_0 : i32, i32, i32
  }
  func.func @transform_2(%arg0: i32) -> (i32, i32) {
    %c0_i32 = arith.constant 0 : i32
    %c0_i32_0 = arith.constant 0 : i32
    return %arg0, %c0_i32 : i32, i32
  }
  func.func @transform_3(%arg0: i32) -> (i32, i32) {
    %c0_i32 = arith.constant 0 : i32
    %c0_i32_0 = arith.constant 0 : i32
    return %arg0, %c0_i32 : i32, i32
  }
  func.func @transform_4(%arg0: i32) -> (i32, i32) {
    %c0_i32 = arith.constant 0 : i32
    %c0_i32_0 = arith.constant 0 : i32
    %c0_i32_1 = arith.constant 0 : i32
    return %c0_i32, %c0_i32_0 : i32, i32
  }
  func.func @transform_5(%arg0: i32) -> (i32, i32) {
    %c0_i32 = arith.constant 0 : i32
    %c0_i32_0 = arith.constant 0 : i32
    %c0_i32_1 = arith.constant 0 : i32
    return %c0_i32, %c0_i32_0 : i32, i32
  }
  func.func @transform_6(%arg0: i32) -> (i32, i32) {
    %c0_i32 = arith.constant 0 : i32
    %c0_i32_0 = arith.constant 0 : i32
    %c0_i32_1 = arith.constant 0 : i32
    return %c0_i32, %c0_i32_0 : i32, i32
  }
  func.func @transform_7(%arg0: i32) -> (i32, i32) {
    %c0_i32 = arith.constant 0 : i32
    %c0_i32_0 = arith.constant 0 : i32
    return %arg0, %c0_i32 : i32, i32
  }
  func.func @transform_8(%arg0: i32) -> (i32, i32) {
    %c0_i32 = arith.constant 0 : i32
    %c0_i32_0 = arith.constant 0 : i32
    return %arg0, %c0_i32 : i32, i32
  }
}

module attributes {stable_mosaic.version = 11 : i64} {
  func.func @_mc_loss_block_kernel(%arg0: i32, %arg1: memref<2x32xf32, #tpu.memory_space<vmem>>, %arg2: memref<2x30x32xf32, #tpu.memory_space<vmem>>, %arg3: memref<2x256xf32, #tpu.memory_space<vmem>>, %arg4: memref<2x256xf32, #tpu.memory_space<vmem>>, %arg5: memref<1x256xf32, #tpu.memory_space<vmem>>, %arg6: memref<256x32xf32, #tpu.memory_space<vmem>>, %arg7: memref<32x32xf32, #tpu.memory_space<vmem>>, %arg8: memref<1x128xf32, #tpu.memory_space<vmem>>, %arg9: memref<1x128xf32, #tpu.memory_space<vmem>>) attributes {dimension_semantics = [#tpu.dimension_semantics<parallel>], iteration_bounds = array<i64: 1>, scalar_prefetch = 0 : i64, scratch_operands = 0 : i64, tpu.core_type = #tpu.core_type<tc>, window_params = [{transform_indices = @transform_0, window_bounds = array<i64: 2, 32>}, {transform_indices = @transform_1, window_bounds = array<i64: 2, 30, 32>}, {transform_indices = @transform_2, window_bounds = array<i64: 2, 256>}, {transform_indices = @transform_3, window_bounds = array<i64: 2, 256>}, {pipeline_mode = #tpu.pipeline_mode<synchronous>, transform_indices = @transform_4, window_bounds = array<i64: 1, 256>}, {pipeline_mode = #tpu.pipeline_mode<synchronous>, transform_indices = @transform_5, window_bounds = array<i64: 256, 32>}, {pipeline_mode = #tpu.pipeline_mode<synchronous>, transform_indices = @transform_6, window_bounds = array<i64: 32, 32>}, {transform_indices = @transform_7, window_bounds = array<i64: 1, 128>}, {transform_indices = @transform_8, window_bounds = array<i64: 1, 128>}]} {
    %c0 = arith.constant 0 : index
    %c0_0 = arith.constant 0 : index
    %0 = vector.load %arg3[%c0, %c0_0] : memref<2x256xf32, #tpu.memory_space<vmem>>, vector<2x256xf32>
    %c0_1 = arith.constant 0 : index
    %c0_2 = arith.constant 0 : index
    %1 = vector.load %arg5[%c0_1, %c0_2] : memref<1x256xf32, #tpu.memory_space<vmem>>, vector<1x256xf32>
    %2 = vector.broadcast %1 : vector<1x256xf32> to vector<2x256xf32>
    %3 = arith.subf %0, %2 : vector<2x256xf32>
    %c0_3 = arith.constant 0 : index
    %c0_4 = arith.constant 0 : index
    %4 = vector.load %arg4[%c0_3, %c0_4] : memref<2x256xf32, #tpu.memory_space<vmem>>, vector<2x256xf32>
    %c0_5 = arith.constant 0 : index
    %c0_6 = arith.constant 0 : index
    %5 = vector.load %arg5[%c0_5, %c0_6] : memref<1x256xf32, #tpu.memory_space<vmem>>, vector<1x256xf32>
    %6 = vector.broadcast %5 : vector<1x256xf32> to vector<2x256xf32>
    %7 = arith.subf %4, %6 : vector<2x256xf32>
    %c0_7 = arith.constant 0 : index
    %c0_8 = arith.constant 0 : index
    %8 = vector.load %arg6[%c0_7, %c0_8] : memref<256x32xf32, #tpu.memory_space<vmem>>, vector<256x32xf32>
    %cst = arith.constant dense<0.000000e+00> : vector<2x32xf32>
    %9 = tpu.matmul %3, %8, %cst {dimension_numbers = #tpu.dot_dimension_numbers<[1], [0], [0], [1], [0, 0, 1, 1], [], []>} : vector<2x256xf32>, vector<256x32xf32>, vector<2x32xf32> -> vector<2x32xf32>
    %cst_9 = arith.constant dense<0.000000e+00> : vector<2x32xf32>
    %10 = tpu.matmul %7, %8, %cst_9 {dimension_numbers = #tpu.dot_dimension_numbers<[1], [0], [0], [1], [0, 0, 1, 1], [], []>} : vector<2x256xf32>, vector<256x32xf32>, vector<2x32xf32> -> vector<2x32xf32>
    %11 = arith.mulf %3, %3 : vector<2x256xf32>
    %cst_10 = arith.constant dense<0.000000e+00> : vector<2xf32>
    %12 = vector.multi_reduction <add>, %11, %cst_10 [1] : vector<2x256xf32> to vector<2xf32>
    %13 = vector.shape_cast %12 : vector<2xf32> to vector<2x1xf32>
    %c0_11 = arith.constant 0 : index
    %c0_12 = arith.constant 0 : index
    %14 = vector.load %arg7[%c0_11, %c0_12] : memref<32x32xf32, #tpu.memory_space<vmem>>, vector<32x32xf32>
    %c0_13 = arith.constant 0 : index
    %c0_14 = arith.constant 0 : index
    %15 = vector.load %arg1[%c0_13, %c0_14] : memref<2x32xf32, #tpu.memory_space<vmem>>, vector<2x32xf32>
    %cst_15 = arith.constant 0.000000e+00 : f32
    %16 = vector.broadcast %cst_15 : f32 to vector<1x1xf32>
    %cst_16 = arith.constant 0.000000e+00 : f32
    %17 = vector.broadcast %cst_16 : f32 to vector<1x1xf32>
    %c0_17 = arith.constant 0 : index
    %c0_18 = arith.constant 0 : index
    %c0_19 = arith.constant 0 : index
    %18 = vector.load %arg2[%c0_17, %c0_18, %c0_19] : memref<2x30x32xf32, #tpu.memory_space<vmem>>, vector<1x30x32xf32>
    %19 = vector.shape_cast %18 : vector<1x30x32xf32> to vector<30x32xf32>
    %20 = vector.extract_strided_slice %10 {offsets = [0, 0], sizes = [1, 32], strides = [1, 1]} : vector<2x32xf32> to vector<1x32xf32>
    %21 = vector.extract_strided_slice %9 {offsets = [0, 0], sizes = [1, 32], strides = [1, 1]} : vector<2x32xf32> to vector<1x32xf32>
    %22 = vector.extract_strided_slice %15 {offsets = [0, 0], sizes = [1, 32], strides = [1, 1]} : vector<2x32xf32> to vector<1x32xf32>
    %23 = vector.extract_strided_slice %13 {offsets = [0, 0], sizes = [1, 1], strides = [1, 1]} : vector<2x1xf32> to vector<1x1xf32>
    %24 = vector.broadcast %20 : vector<1x32xf32> to vector<30x32xf32>
    %25 = arith.mulf %19, %24 : vector<30x32xf32>
    %cst_20 = arith.constant dense<0.000000e+00> : vector<30x32xf32>
    %26 = tpu.matmul %25, %14, %cst_20 {dimension_numbers = #tpu.dot_dimension_numbers<[1], [0], [0], [1], [0, 0, 1, 1], [], []>} : vector<30x32xf32>, vector<32x32xf32>, vector<30x32xf32> -> vector<30x32xf32>
    %27 = arith.mulf %26, %25 : vector<30x32xf32>
    %cst_21 = arith.constant dense<0.000000e+00> : vector<30xf32>
    %28 = vector.multi_reduction <add>, %27, %cst_21 [1] : vector<30x32xf32> to vector<30xf32>
    %29 = vector.shape_cast %28 : vector<30xf32> to vector<30x1xf32>
    %30 = vector.broadcast %21 : vector<1x32xf32> to vector<30x32xf32>
    %31 = arith.mulf %25, %30 : vector<30x32xf32>
    %cst_22 = arith.constant dense<0.000000e+00> : vector<30xf32>
    %32 = vector.multi_reduction <add>, %31, %cst_22 [1] : vector<30x32xf32> to vector<30xf32>
    %33 = vector.shape_cast %32 : vector<30xf32> to vector<30x1xf32>
    %cst_23 = arith.constant 2.000000e+00 : f32
    %34 = vector.broadcast %cst_23 : f32 to vector<30x1xf32>
    %35 = arith.mulf %34, %33 : vector<30x1xf32>
    %36 = arith.subf %29, %35 : vector<30x1xf32>
    %37 = vector.broadcast %23 : vector<1x1xf32> to vector<30x1xf32>
    %38 = arith.addf %36, %37 : vector<30x1xf32>
    %cst_24 = arith.constant 3.906250e-03 : f32
    %39 = vector.broadcast %cst_24 : f32 to vector<30x1xf32>
    %40 = arith.mulf %38, %39 : vector<30x1xf32>
    %cst_25 = arith.constant dense<0.000000e+00> : vector<30xf32>
    %41 = vector.multi_reduction <add>, %19, %cst_25 [1] : vector<30x32xf32> to vector<30xf32>
    %42 = vector.shape_cast %41 : vector<30xf32> to vector<30x1xf32>
    %cst_26 = arith.constant 0.00999999977 : f32
    %43 = vector.broadcast %cst_26 : f32 to vector<30x1xf32>
    %44 = arith.mulf %43, %42 : vector<30x1xf32>
    %45 = arith.addf %40, %44 : vector<30x1xf32>
    %cst_27 = arith.constant dense<0.000000e+00> : vector<1xf32>
    %46 = vector.multi_reduction <add>, %42, %cst_27 [0] : vector<30x1xf32> to vector<1xf32>
    %47 = vector.shape_cast %46 : vector<1xf32> to vector<1x1xf32>
    %cst_28 = arith.constant 0.000000e+00 : f32
    %48 = vector.broadcast %cst_28 : f32 to vector<1x1xf32>
    %49 = arith.cmpf ogt, %47, %48 : vector<1x1xf32>
    %cst_29 = arith.constant 0.000000e+00 : f32
    %50 = vector.broadcast %cst_29 : f32 to vector<30x1xf32>
    %51 = vector.shape_cast %49 : vector<1x1xi1> to vector<1x1xi1>
    %52 = vector.broadcast %51 : vector<1x1xi1> to vector<30x1xi1>
    %53 = arith.select %52, %45, %50 : vector<30x1xi1>, vector<30x1xf32>
    %cst_30 = arith.constant 1.000000e+00 : f32
    %54 = vector.broadcast %cst_30 : f32 to vector<30x32xf32>
    %55 = arith.subf %54, %19 : vector<30x32xf32>
    %56 = vector.broadcast %22 : vector<1x32xf32> to vector<30x32xf32>
    %57 = arith.subf %55, %56 : vector<30x32xf32>
    %58 = math.absf %57 : vector<30x32xf32>
    %59 = math.log %58 : vector<30x32xf32>
    %cst_31 = arith.constant dense<0.000000e+00> : vector<30xf32>
    %60 = vector.multi_reduction <add>, %59, %cst_31 [1] : vector<30x32xf32> to vector<30xf32>
    %61 = vector.shape_cast %60 : vector<30xf32> to vector<30x1xf32>
    %cst_32 = arith.constant 3.125000e-02 : f32
    %62 = vector.broadcast %cst_32 : f32 to vector<30x1xf32>
    %63 = arith.mulf %61, %62 : vector<30x1xf32>
    %cst_33 = arith.constant 1.000000e+00 : f32
    %64 = vector.broadcast %cst_33 : f32 to vector<30x1xf32>
    %65 = arith.addf %63, %64 : vector<30x1xf32>
    %66 = vector.shape_cast %53 : vector<30x1xf32> to vector<1x30x1xf32>
    %cst_34 = arith.constant dense<0.000000e+00> : vector<1xf32>
    %67 = vector.multi_reduction <add>, %66, %cst_34 [1, 2] : vector<1x30x1xf32> to vector<1xf32>
    %68 = vector.shape_cast %67 : vector<1xf32> to vector<1x1x1xf32>
    %69 = vector.extract %68[0, 0, 0] : f32 from vector<1x1x1xf32>
    %70 = vector.broadcast %69 : f32 to vector<1x1xf32>
    %71 = arith.addf %16, %70 : vector<1x1xf32>
    %72 = arith.mulf %53, %65 : vector<30x1xf32>
    %73 = vector.shape_cast %72 : vector<30x1xf32> to vector<1x30x1xf32>
    %cst_35 = arith.constant dense<0.000000e+00> : vector<1xf32>
    %74 = vector.multi_reduction <add>, %73, %cst_35 [1, 2] : vector<1x30x1xf32> to vector<1xf32>
    %75 = vector.shape_cast %74 : vector<1xf32> to vector<1x1x1xf32>
    %76 = vector.extract %75[0, 0, 0] : f32 from vector<1x1x1xf32>
    %77 = vector.broadcast %76 : f32 to vector<1x1xf32>
    %78 = arith.addf %17, %77 : vector<1x1xf32>
    %c1 = arith.constant 1 : index
    %c0_36 = arith.constant 0 : index
    %c0_37 = arith.constant 0 : index
    %79 = vector.load %arg2[%c1, %c0_36, %c0_37] : memref<2x30x32xf32, #tpu.memory_space<vmem>>, vector<1x30x32xf32>
    %80 = vector.shape_cast %79 : vector<1x30x32xf32> to vector<30x32xf32>
    %81 = vector.extract_strided_slice %10 {offsets = [1, 0], sizes = [1, 32], strides = [1, 1]} : vector<2x32xf32> to vector<1x32xf32>
    %82 = vector.extract_strided_slice %9 {offsets = [1, 0], sizes = [1, 32], strides = [1, 1]} : vector<2x32xf32> to vector<1x32xf32>
    %83 = vector.extract_strided_slice %15 {offsets = [1, 0], sizes = [1, 32], strides = [1, 1]} : vector<2x32xf32> to vector<1x32xf32>
    %84 = vector.extract_strided_slice %13 {offsets = [1, 0], sizes = [1, 1], strides = [1, 1]} : vector<2x1xf32> to vector<1x1xf32>
    %85 = vector.broadcast %81 : vector<1x32xf32> to vector<30x32xf32>
    %86 = arith.mulf %80, %85 : vector<30x32xf32>
    %cst_38 = arith.constant dense<0.000000e+00> : vector<30x32xf32>
    %87 = tpu.matmul %86, %14, %cst_38 {dimension_numbers = #tpu.dot_dimension_numbers<[1], [0], [0], [1], [0, 0, 1, 1], [], []>} : vector<30x32xf32>, vector<32x32xf32>, vector<30x32xf32> -> vector<30x32xf32>
    %88 = arith.mulf %87, %86 : vector<30x32xf32>
    %cst_39 = arith.constant dense<0.000000e+00> : vector<30xf32>
    %89 = vector.multi_reduction <add>, %88, %cst_39 [1] : vector<30x32xf32> to vector<30xf32>
    %90 = vector.shape_cast %89 : vector<30xf32> to vector<30x1xf32>
    %91 = vector.broadcast %82 : vector<1x32xf32> to vector<30x32xf32>
    %92 = arith.mulf %86, %91 : vector<30x32xf32>
    %cst_40 = arith.constant dense<0.000000e+00> : vector<30xf32>
    %93 = vector.multi_reduction <add>, %92, %cst_40 [1] : vector<30x32xf32> to vector<30xf32>
    %94 = vector.shape_cast %93 : vector<30xf32> to vector<30x1xf32>
    %cst_41 = arith.constant 2.000000e+00 : f32
    %95 = vector.broadcast %cst_41 : f32 to vector<30x1xf32>
    %96 = arith.mulf %95, %94 : vector<30x1xf32>
    %97 = arith.subf %90, %96 : vector<30x1xf32>
    %98 = vector.broadcast %84 : vector<1x1xf32> to vector<30x1xf32>
    %99 = arith.addf %97, %98 : vector<30x1xf32>
    %cst_42 = arith.constant 3.906250e-03 : f32
    %100 = vector.broadcast %cst_42 : f32 to vector<30x1xf32>
    %101 = arith.mulf %99, %100 : vector<30x1xf32>
    %cst_43 = arith.constant dense<0.000000e+00> : vector<30xf32>
    %102 = vector.multi_reduction <add>, %80, %cst_43 [1] : vector<30x32xf32> to vector<30xf32>
    %103 = vector.shape_cast %102 : vector<30xf32> to vector<30x1xf32>
    %cst_44 = arith.constant 0.00999999977 : f32
    %104 = vector.broadcast %cst_44 : f32 to vector<30x1xf32>
    %105 = arith.mulf %104, %103 : vector<30x1xf32>
    %106 = arith.addf %101, %105 : vector<30x1xf32>
    %cst_45 = arith.constant dense<0.000000e+00> : vector<1xf32>
    %107 = vector.multi_reduction <add>, %103, %cst_45 [0] : vector<30x1xf32> to vector<1xf32>
    %108 = vector.shape_cast %107 : vector<1xf32> to vector<1x1xf32>
    %cst_46 = arith.constant 0.000000e+00 : f32
    %109 = vector.broadcast %cst_46 : f32 to vector<1x1xf32>
    %110 = arith.cmpf ogt, %108, %109 : vector<1x1xf32>
    %cst_47 = arith.constant 0.000000e+00 : f32
    %111 = vector.broadcast %cst_47 : f32 to vector<30x1xf32>
    %112 = vector.shape_cast %110 : vector<1x1xi1> to vector<1x1xi1>
    %113 = vector.broadcast %112 : vector<1x1xi1> to vector<30x1xi1>
    %114 = arith.select %113, %106, %111 : vector<30x1xi1>, vector<30x1xf32>
    %cst_48 = arith.constant 1.000000e+00 : f32
    %115 = vector.broadcast %cst_48 : f32 to vector<30x32xf32>
    %116 = arith.subf %115, %80 : vector<30x32xf32>
    %117 = vector.broadcast %83 : vector<1x32xf32> to vector<30x32xf32>
    %118 = arith.subf %116, %117 : vector<30x32xf32>
    %119 = math.absf %118 : vector<30x32xf32>
    %120 = math.log %119 : vector<30x32xf32>
    %cst_49 = arith.constant dense<0.000000e+00> : vector<30xf32>
    %121 = vector.multi_reduction <add>, %120, %cst_49 [1] : vector<30x32xf32> to vector<30xf32>
    %122 = vector.shape_cast %121 : vector<30xf32> to vector<30x1xf32>
    %cst_50 = arith.constant 3.125000e-02 : f32
    %123 = vector.broadcast %cst_50 : f32 to vector<30x1xf32>
    %124 = arith.mulf %122, %123 : vector<30x1xf32>
    %cst_51 = arith.constant 1.000000e+00 : f32
    %125 = vector.broadcast %cst_51 : f32 to vector<30x1xf32>
    %126 = arith.addf %124, %125 : vector<30x1xf32>
    %127 = vector.shape_cast %114 : vector<30x1xf32> to vector<1x30x1xf32>
    %cst_52 = arith.constant dense<0.000000e+00> : vector<1xf32>
    %128 = vector.multi_reduction <add>, %127, %cst_52 [1, 2] : vector<1x30x1xf32> to vector<1xf32>
    %129 = vector.shape_cast %128 : vector<1xf32> to vector<1x1x1xf32>
    %130 = vector.extract %129[0, 0, 0] : f32 from vector<1x1x1xf32>
    %131 = vector.broadcast %130 : f32 to vector<1x1xf32>
    %132 = arith.addf %71, %131 : vector<1x1xf32>
    %133 = arith.mulf %114, %126 : vector<30x1xf32>
    %134 = vector.shape_cast %133 : vector<30x1xf32> to vector<1x30x1xf32>
    %cst_53 = arith.constant dense<0.000000e+00> : vector<1xf32>
    %135 = vector.multi_reduction <add>, %134, %cst_53 [1, 2] : vector<1x30x1xf32> to vector<1xf32>
    %136 = vector.shape_cast %135 : vector<1xf32> to vector<1x1x1xf32>
    %137 = vector.extract %136[0, 0, 0] : f32 from vector<1x1x1xf32>
    %138 = vector.broadcast %137 : f32 to vector<1x1xf32>
    %139 = arith.addf %78, %138 : vector<1x1xf32>
    %140 = vector.shape_cast %132 : vector<1x1xf32> to vector<1x1xf32>
    %141 = vector.broadcast %140 : vector<1x1xf32> to vector<1x128xf32>
    %c0_54 = arith.constant 0 : index
    %c0_55 = arith.constant 0 : index
    %142 = vector.load %arg8[%c0_54, %c0_55] : memref<1x128xf32, #tpu.memory_space<vmem>>, vector<1x128xf32>
    tpu.vector_store %arg8[%c0_54, %c0_55], %141 {strides = array<i32>} : memref<1x128xf32, #tpu.memory_space<vmem>>, vector<1x128xf32>,
    %143 = vector.shape_cast %139 : vector<1x1xf32> to vector<1x1xf32>
    %144 = vector.broadcast %143 : vector<1x1xf32> to vector<1x128xf32>
    %c0_56 = arith.constant 0 : index
    %c0_57 = arith.constant 0 : index
    %145 = vector.load %arg9[%c0_56, %c0_57] : memref<1x128xf32, #tpu.memory_space<vmem>>, vector<1x128xf32>
    tpu.vector_store %arg9[%c0_56, %c0_57], %144 {strides = array<i32>} : memref<1x128xf32, #tpu.memory_space<vmem>>, vector<1x128xf32>,
    return
  }
  func.func @transform_0(%arg0: i32) -> (i32, i32) {
    %c0_i32 = arith.constant 0 : i32
    %c0_i32_0 = arith.constant 0 : i32
    return %arg0, %c0_i32 : i32, i32
  }
  func.func @transform_1(%arg0: i32) -> (i32, i32, i32) {
    %c0_i32 = arith.constant 0 : i32
    %c0_i32_0 = arith.constant 0 : i32
    %c0_i32_1 = arith.constant 0 : i32
    return %arg0, %c0_i32, %c0_i32_0 : i32, i32, i32
  }
  func.func @transform_2(%arg0: i32) -> (i32, i32) {
    %c0_i32 = arith.constant 0 : i32
    %c0_i32_0 = arith.constant 0 : i32
    return %arg0, %c0_i32 : i32, i32
  }
  func.func @transform_3(%arg0: i32) -> (i32, i32) {
    %c0_i32 = arith.constant 0 : i32
    %c0_i32_0 = arith.constant 0 : i32
    return %arg0, %c0_i32 : i32, i32
  }
  func.func @transform_4(%arg0: i32) -> (i32, i32) {
    %c0_i32 = arith.constant 0 : i32
    %c0_i32_0 = arith.constant 0 : i32
    %c0_i32_1 = arith.constant 0 : i32
    return %c0_i32, %c0_i32_0 : i32, i32
  }
  func.func @transform_5(%arg0: i32) -> (i32, i32) {
    %c0_i32 = arith.constant 0 : i32
    %c0_i32_0 = arith.constant 0 : i32
    %c0_i32_1 = arith.constant 0 : i32
    return %c0_i32, %c0_i32_0 : i32, i32
  }
  func.func @transform_6(%arg0: i32) -> (i32, i32) {
    %c0_i32 = arith.constant 0 : i32
    %c0_i32_0 = arith.constant 0 : i32
    %c0_i32_1 = arith.constant 0 : i32
    return %c0_i32, %c0_i32_0 : i32, i32
  }
  func.func @transform_7(%arg0: i32) -> (i32, i32) {
    %c0_i32 = arith.constant 0 : i32
    %c0_i32_0 = arith.constant 0 : i32
    return %arg0, %c0_i32 : i32, i32
  }
  func.func @transform_8(%arg0: i32) -> (i32, i32) {
    %c0_i32 = arith.constant 0 : i32
    %c0_i32_0 = arith.constant 0 : i32
    return %arg0, %c0_i32 : i32, i32
  }
}

</mosaic_0001>

<bundles_post_ra>
// kernel: tpu_custom_call.1
= control target key start
LH: loop header
LB: loop body
LE: loop exit
PB: predicated region body
PF: predicated region fallthrough
CT: control target
= control target key end

     0   :  { %14 = vsyncpa [#allocation3], 0  ;;  %vm36_vm0 = vcmask 1041408   ;;  %s1124_s0 = inlined_call_operand.vmem [shape: f32[2,32], index: 0, kind: input, shape index: {}]   ;;  %s1125_s1 = inlined_call_operand.vmem [shape: f32[2,30,32], index: 1, kind: input, shape index: {}]   ;;  %s1126_s2 = inlined_call_operand.vmem [shape: f32[2,256], index: 2, kind: input, shape index: {}]   ;;  %s1127_s3 = inlined_call_operand.vmem [shape: f32[2,256], index: 3, kind: input, shape index: {}]   ;;  %s1128_s4 = inlined_call_operand.vmem [shape: f32[1,256], index: 4, kind: input, shape index: {}]   ;;  %s1129_s5 = inlined_call_operand.vmem [shape: f32[256,32], index: 5, kind: input, shape index: {}]   ;;  %s1130_s6 = inlined_call_operand.vmem [shape: f32[32,32], index: 6, kind: input, shape index: {}]   ;;  %s1131_s7 = inlined_call_operand.hbm [shape: f32[1,128], index: 7, kind: output, shape index: {0}]   ;;  %s1132_s8 = inlined_call_operand.hbm [shape: f32[1,128], index: 8, kind: output, shape index: {1}]  }
   0x1   :  { %v57_v0 = vld [vmem:[%s1129_s5 + $0x78] sm:$0xff]  ;;  %v56_v2 = vld [vmem:[%s1129_s5 + $0x70] sm:$0xff]  ;;  %v55_v4 = vld [vmem:[%s1129_s5 + $0x68] sm:$0xff] }
   0x2   :  { %v73_v1 = vld [vmem:[%s1129_s5 + $0xf8] sm:$0xff]  ;;  %126 = vmatpush.msra.mxu2 %v57_v0  ;;  %v72_v3 = vld [vmem:[%s1129_s5 + $0xf0] sm:$0xff]  ;;  %v71_v5 = vld [vmem:[%s1129_s5 + $0xe8] sm:$0xff]  ;;  %80 = vmatpush.msra.mxu0 %v57_v0 }
   0x3   :  { %146 = vmatpush.msra.mxu3 %v73_v1  ;;  %100 = vmatpush.msra.mxu1 %v73_v1  ;;  %v54_v6 = vld [vmem:[%s1129_s5 + $0x60] sm:$0xff]  ;;  %v53_v8 = vld [vmem:[%s1129_s5 + $0x58] sm:$0xff]  ;;  %v52_v10 = vld [vmem:[%s1129_s5 + $0x50] sm:$0xff] }
   0x4   :  { %127 = vmatpush.msra.mxu2 %v56_v2  ;;  %v70_v7 = vld [vmem:[%s1129_s5 + $0xe0] sm:$0xff]  ;;  %81 = vmatpush.msra.mxu0 %v56_v2  ;;  %v69_v9 = vld [vmem:[%s1129_s5 + $0xd8] sm:$0xff]  ;;  %v68_v11 = vld [vmem:[%s1129_s5 + $0xd0] sm:$0xff] }
   0x5   :  { %147 = vmatpush.msra.mxu3 %v72_v3  ;;  %101 = vmatpush.msra.mxu1 %v72_v3  ;;  %v51_v12 = vld [vmem:[%s1129_s5 + $0x48] sm:$0xff]  ;;  %v31_v14 = vld [vmem:[%s1128_s4] sm:$0x3]  ;;  %v49_v19 = vld [vmem:[%s1129_s5 + $0x38] sm:$0xff] }
   0x6   :  { %128 = vmatpush.msra.mxu2 %v55_v4  ;;  %82 = vmatpush.msra.mxu0 %v55_v4  ;;  %v67_v13 = vld [vmem:[%s1129_s5 + $0xc8] sm:$0xff]  ;;  %v50_v15 = vld [vmem:[%s1129_s5 + $0x40] sm:$0xff]  ;;  %v33_v17 = vperm.slane %v31_v14, 0  ;;  %v34_v18 = vperm.slane %v31_v14, 1  ;;  %v65_v20 = vld [vmem:[%s1129_s5 + $0xb8] sm:$0xff] }
   0x7   :  { %148 = vmatpush.msra.mxu3 %v71_v5  ;;  %102 = vmatpush.msra.mxu1 %v71_v5  ;;  %v66_v16 = vld [vmem:[%s1129_s5 + $0xc0] sm:$0xff] }
   0x8   :  { %129 = vmatpush.msra.mxu2 %v54_v6  ;;  %83 = vmatpush.msra.mxu0 %v54_v6  ;;  %v30_v21 = vld [vmem:[%s1126_s2] sm:$0xf]  ;;  %v35_v22 = vrot.slane %v34_v18, 6 }
   0x9   :  { %149 = vmatpush.msra.mxu3 %v70_v7  ;;  %103 = vmatpush.msra.mxu1 %v70_v7 }
   0xa   :  { %130 = vmatpush.msra.mxu2 %v53_v8  ;;  %84 = vmatpush.msra.mxu0 %v53_v8 }
   0xb   :  { %150 = vmatpush.msra.mxu3 %v69_v9  ;;  %104 = vmatpush.msra.mxu1 %v69_v9 }
   0xc   :  { %131 = vmatpush.msra.mxu2 %v52_v10  ;;  %85 = vmatpush.msra.mxu0 %v52_v10 }
   0xd   :  { %151 = vmatpush.msra.mxu3 %v68_v11  ;;  %105 = vmatpush.msra.mxu1 %v68_v11 }
   0xe   :  { %132 = vmatpush.msra.mxu2 %v51_v12  ;;  %86 = vmatpush.msra.mxu0 %v51_v12 }
   0xf   :  { %152 = vmatpush.msra.mxu3 %v67_v13  ;;  %106 = vmatpush.msra.mxu1 %v67_v13 }
  0x10   :  { %133 = vmatpush.msra.mxu2 %v50_v15 }
  0x11   :  { %153 = vmatpush.msra.mxu3 %v66_v16 }
  0x12   :  { %15 = vsyncpa [#allocation5], 0  ;;  %v48_v23 = vld [vmem:[%s1129_s5 + $0x30] sm:$0xff]  ;;  %87 = vmatpush.msra.mxu0 %v50_v15  ;;  %107 = vmatpush.msra.mxu1 %v66_v16  ;;  %v37_v25 = vsel %vm36_vm0, %v33_v17, %v35_v22  ;;  %v47_v27 = vld [vmem:[%s1129_s5 + $0x28] sm:$0xff]  ;;  %vm192_vm1 = vcmask 261120   ;;  %vm247_vm2 = vcmask 259072  }
  0x13   :  { %v64_v24 = vld [vmem:[%s1129_s5 + $0xb0] sm:$0xff]  ;;  %134 = vmatpush.msra.mxu2 %v49_v19  ;;  %154 = vmatpush.msra.mxu3 %v65_v20  ;;  %v39_v26 = vsub.f32 %v30_v21, %v37_v25  ;;  %v63_v28 = vld [vmem:[%s1129_s5 + $0xa8] sm:$0xff]  ;;  %v46_v29 = vld [vmem:[%s1129_s5 + $0x20] sm:$0xff]  ;;  %vm307_vm3 = vcmask 1045504   ;;  %vm364_vm5 = vcmask 7168   ;;  %vm370_vm7 = vcmask 5120  }
  0x14   :  { %88 = vmatpush.msra.mxu0 %v49_v19  ;;  %108 = vmatpush.msra.mxu1 %v65_v20  ;;  %v62_v30 = vld [vmem:[%s1129_s5 + $0xa0] sm:$0xff]  ;;  %v45_v32 = vld [vmem:[%s1129_s5 + $0x18] sm:$0xff]  ;;  %v895_v34 = vld [vmem:[%s1125_s1 + $0x8] sm:$0xff]  ;;  %s757_s28 = smov [#allocation2]   ;;  %s758_s30 = smov [#allocation4]  }
  0x15   :  { %135 = vmatpush.msra.mxu2 %v48_v23  ;;  %155 = vmatpush.msra.mxu3 %v64_v24  ;;  %75 = vst [vmem:[#allocation1] ss:$4 sm:$0xff] %v39_v26  ;;  %v40_v31 = vld [vmem:[%s1127_s3] sm:$0xf]  ;;  %v61_v33 = vld [vmem:[%s1129_s5 + $0x98] sm:$0xff]  ;;  %v44_v36 = vld [vmem:[%s1129_s5 + $0x10] sm:$0xff]  ;;  %v166_v54 = vmul.f32 %v39_v26, %v39_v26 }
  0x16   :  { %89 = vmatpush.msra.mxu0 %v48_v23  ;;  %109 = vmatpush.msra.mxu1 %v64_v24  ;;  %v41_v35 = vsub.f32 %v40_v31, %v37_v25  ;;  %v60_v37 = vld [vmem:[%s1129_s5 + $0x90] sm:$0xff]  ;;  %v182_v38 = vld [vmem:[%s1124_s0] sm:$0x3]  ;;  %v43_v39 = vld [vmem:[%s1129_s5 + $0x8] sm:$0xff]  ;;  %v324_v41 = vsub.f32 1.0, %v895_v34  ;;  %v288_v5 = vsel %vm192_vm1, %v895_v34, 0.0 }
  0x17   :  { %136 = vmatpush.msra.mxu2 %v47_v27  ;;  %156 = vmatpush.msra.mxu3 %v63_v28  ;;  %v59_v40 = vld [vmem:[%s1129_s5 + $0x88] sm:$0xff]  ;;  %v42_v44 = vld [vmem:[%s1129_s5] sm:$0xff]  ;;  %v916_v45 = vperm.slane %v182_v38, 0  ;;  %v932_v50 = vperm.slane %v182_v38, 1  ;;  %v939_v53 = vld [vmem:[%s1125_s1 + $0x10] sm:$0xff]  ;;  %s634_s0 = sshll.u32 %s1131_s7, 4  ;;  %s635_s0 = int_to_ptr.hbm [resolvable:$true] %s634_s0 }
  0x18   :  { %90 = vmatpush.msra.mxu0 %v47_v27  ;;  %110 = vmatpush.msra.mxu1 %v63_v28  ;;  %v58_v46 = vld [vmem:[%s1129_s5 + $0x80] sm:$0xff]  ;;  %v291_v58 = vsel %vm192_vm1, %v939_v53, 0.0  ;;  %v181_v60 = vld [vmem:[%s1130_s6 + $0x18] sm:$0xff]  ;;  %v955_v0 = vld [vmem:[%s1125_s1 + $0x28] sm:$0xff]  ;;  %v325_v21 = vsub.f32 1.0, %v939_v53  ;;  %s632_s29 = sshll.u32 %s757_s28, 4  ;;  %s633_s29 = int_to_ptr.vmem [resolvable:$true] %s632_s29 }
  0x19   :  { %137 = vmatpush.msra.mxu2 %v46_v29  ;;  %157 = vmatpush.msra.mxu3 %v62_v30  ;;  %v924_v47 = vld [vmem:[%s1125_s1 + $0x20] sm:$0xff]  ;;  %v329_v51 = vsub.f32 %v324_v41, %v916_v45  ;;  %v960_v2 = vld [vmem:[%s1125_s1 + $0x30] sm:$0xff]  ;;  %v510_v4 = vsel %vm192_vm1, %v955_v0, 0.0  ;;  %v971_v8 = vld [vmem:[%s1125_s1 + $0x38] sm:$0x3f]  ;;  %v545_v20 = vsub.f32 1.0, %v955_v0 }
  0x1a   :  { %91 = vmatpush.msra.mxu0 %v46_v29  ;;  %111 = vmatpush.msra.mxu1 %v62_v30  ;;  %v929_v48 = vld [vmem:[%s1125_s1] sm:$0xff]  ;;  %v544_v49 = vsub.f32 1.0, %v924_v47  ;;  %v507_v55 = vsel %vm192_vm1, %v924_v47, 0.0  ;;  %v513_v6 = vsel %vm192_vm1, %v960_v2, 0.0  ;;  %v976_v9 = vld [vmem:[%s1125_s1 + $0x18] sm:$0x3f]  ;;  %v330_v22 = vsub.f32 %v325_v21, %v916_v45 }
  0x1b   :  { %138 = vmatpush.msra.mxu2 %v45_v32  ;;  %158 = vmatpush.msra.mxu3 %v61_v33  ;;  %v323_v52 = vsub.f32 1.0, %v929_v48  ;;  %v285_v56 = vsel %vm192_vm1, %v929_v48, 0.0  ;;  %v333_v57 = vand.u32 2147483647, %v329_v51  ;;  %v516_v12 = vsel %vm247_vm2, %v971_v8, 0.0  ;;  %s643_s9 = sshll.u32 %s758_s30, 4  ;;  %s644_s9 = int_to_ptr.vmem [resolvable:$true] %s643_s9 }
  0x1c   :  { %v76_v42 = vld.sshfl [vmem:[#allocation1] sm:$0xff pattern:$0x73625140]  ;;  %v77_v43 = vld.sshfl [vmem:[#allocation1 + $0x8] sm:$0xff pattern:$0x73625140]  ;;  %92 = vmatpush.msra.mxu0 %v45_v32  ;;  %112 = vmatpush.msra.mxu1 %v61_v33  ;;  %v549_v59 = vsub.f32 %v544_v49, %v932_v50  ;;  %v550_v23 = vsub.f32 %v545_v20, %v932_v50 }
  0x1d   :  { %139 = vmatpush.msra.mxu2 %v44_v36  ;;  %159 = vmatpush.msra.mxu3 %v60_v37  ;;  %121 = vst [vmem:[#allocation1] ss:$4 sm:$0xff] %v41_v35  ;;  %v328_v63 = vsub.f32 %v323_v52, %v916_v45  ;;  %689 = vlog2.f32 %v333_v57  ;;  %v294_v13 = vsel %vm247_vm2, %v976_v9, 0.0  ;;  %v334_v24 = vand.u32 2147483647, %v330_v22  ;;  %v180_v35 = vld [vmem:[%s1130_s6 + $0x10] sm:$0xff] }
  0x1e   :  { %93 = vmatpush.msra.mxu0 %v44_v36  ;;  %113 = vmatpush.msra.mxu1 %v60_v37  ;;  %v553_v1 = vand.u32 2147483647, %v549_v59  ;;  %v554_v25 = vand.u32 2147483647, %v550_v23  ;;  %s645_s11 = sshll.u32 %s1132_s8, 4  ;;  %s646_s11 = int_to_ptr.hbm [resolvable:$true] %s645_s11 }
  0x1f   :  { %140 = vmatpush.msra.mxu2 %v43_v39  ;;  %160 = vmatpush.msra.mxu3 %v59_v40  ;;  %v332_v3 = vand.u32 2147483647, %v328_v63 }
  0x20   :  { %94 = vmatpush.msra.mxu0 %v43_v39  ;;  %114 = vmatpush.msra.mxu1 %v59_v40  ;;  %691 = vlog2.f32 %v553_v1  ;;  %v179_v39 = vld [vmem:[%s1130_s6 + $0x8] sm:$0xff]  ;;  %v178_v40 = vld [vmem:[%s1130_s6] sm:$0xff] }
  0x21   :  { %141 = vmatpush.msra.mxu2 %v42_v44  ;;  %161 = vmatpush.msra.mxu3 %v58_v46  ;;  %693 = vlog2.f32 %v332_v3 }
  0x22   :  { %95 = vmatpush.msra.mxu0 %v42_v44  ;;  %115 = vmatpush.msra.mxu1 %v58_v46  ;;  %695 = vlog2.f32 %v334_v24 }
  0x23   :  { %96 = vmatmul.f32.vlgmr.msra.gmra.mxu0 %v76_v42  ;;  %116 = vmatmul.f32.vlgmr.msra.gmra.mxu1 %v77_v43  ;;  %v690_v7 = vpop.eup %689  ;;  %697 = vlog2.f32 %v554_v25 }
  0x24   :  { %v122_v61 = vld.sshfl [vmem:[#allocation1] sm:$0xff pattern:$0x73625140]  ;;  %v123_v62 = vld.sshfl [vmem:[#allocation1 + $0x8] sm:$0xff pattern:$0x73625140]  ;;  %508 = vadd.xlane.f32.xlu1 %v507_v55  ;;  %286 = vadd.xlane.f32.xlu0 %v285_v56 }
  0x25   :  { %142 = vmatmul.f32.vlgmr.msra.gmra.mxu2 %v122_v61  ;;  %162 = vmatmul.f32.vlgmr.msra.gmra.mxu3 %v123_v62  ;;  %168 = vst [vmem:[#allocation1] ss:$4 sm:$0xff] %v166_v54  ;;  %v339_v10 = vmul.f32 0.6931472, %v690_v7 }
  0x26   :  { %292 = vadd.xlane.f32.xlu2 %v291_v58  ;;  %217 = vmatpush.msrb.mxu0 %v181_v60  ;;  %v692_v11 = vpop.eup %691 }
  0x27   :  { %671 = vmatpush.msrb.mxu2 %v181_v60  ;;  %440 = vmatpush.msrb.mxu1 %v181_v60  ;;  %v694_v14 = vpop.eup %693  ;;  %v347_v15 = vsel %vm192_vm1, %v339_v10, 0.0  ;;  %v558_v16 = vmul.f32 0.6931472, %v692_v11 }
  0x28   :  { %675 = vmatpush.msrb.mxu3 %v181_v60  ;;  %v337_v17 = vmul.f32 0.6931472, %v694_v14  ;;  %v696_v26 = vpop.eup %695  ;;  %218 = vmatpush.msrb.mxu0 %v180_v35 }
  0x29   :  { %v565_v18 = vsel %vm192_vm1, %v558_v16, 0.0  ;;  %v698_v29 = vpop.eup %697  ;;  %v341_v30 = vmul.f32 0.6931472, %v696_v26  ;;  %672 = vmatpush.msrb.mxu2 %v180_v35  ;;  %441 = vmatpush.msrb.mxu1 %v180_v35  ;;  %v326_v16 = vsub.f32 1.0, %v976_v9  ;;  %v547_v26 = vsub.f32 1.0, %v971_v8 }
  0x2a   :  { %v344_v19 = vsel %vm192_vm1, %v337_v17, 0.0  ;;  %v560_v33 = vmul.f32 0.6931472, %v698_v29  ;;  %676 = vmatpush.msrb.mxu3 %v180_v35  ;;  %219 = vmatpush.msrb.mxu0 %v179_v39 }
  0x2b   :  { %v350_v36 = vsel %vm192_vm1, %v341_v30, 0.0  ;;  %673 = vmatpush.msrb.mxu2 %v179_v39  ;;  %442 = vmatpush.msrb.mxu1 %v179_v39  ;;  %v331_v22 = vsub.f32 %v326_v16, %v916_v45  ;;  %v552_v45 = vsub.f32 %v547_v26, %v932_v50 }
  0x2c   :  { %511 = vadd.xlane.f32.xlu1 %v510_v4  ;;  %289 = vadd.xlane.f32.xlu0 %v288_v5  ;;  %v169_v27 = vld.sshfl [vmem:[#allocation1] sm:$0xff pattern:$0x73625140]  ;;  %v170_v28 = vld.sshfl [vmem:[#allocation1 + $0x8] sm:$0xff pattern:$0x73625140] }
  0x2d   :  { %v173_v31 = vsel %vm36_vm0, %v169_v27, 0.0  ;;  %v174_v32 = vsel %vm36_vm0, %v170_v28, 0.0  ;;  %v568_v38 = vsel %vm192_vm1, %v560_v33, 0.0  ;;  %677 = vmatpush.msrb.mxu3 %v179_v39  ;;  %220 = vmatpush.msrb.mxu0 %v178_v40 }
  0x2e   :  { %514 = vadd.xlane.f32.xlu2 %v513_v6  ;;  %v175_v37 = vadd.f32 %v174_v32, %v173_v31  ;;  %674 = vmatpush.msrb.mxu2 %v178_v40 }
  0x2f   :  { %443 = vmatpush.msrb.mxu1 %v178_v40  ;;  %678 = vmatpush.msrb.mxu3 %v178_v40 }
  0x34   :  { %517 = vadd.xlane.f32.xlu1 %v516_v12  ;;  %295 = vadd.xlane.f32.xlu0 %v294_v13 }
  0x36   :  { %348 = vadd.xlane.f32.xlu2 %v347_v15  ;;  %v546_v15 = vsub.f32 1.0, %v960_v2 }
  0x38   :  { %v551_v21 = vsub.f32 %v546_v15, %v932_v50 }
  0x3a   :  { %v555_v25 = vand.u32 2147483647, %v551_v21 }
  0x3c   :  { %566 = vadd.xlane.f32.xlu0 %v565_v18  ;;  %345 = vadd.xlane.f32.xlu1 %v344_v19  ;;  %699 = vlog2.f32 %v555_v25 }
  0x3e   :  { %351 = vadd.xlane.f32.xlu2 %v350_v36 }
  0x42   :  { %v700_v39 = vpop.eup %699 }
  0x44   :  { %569 = vadd.xlane.f32.xlu1 %v568_v38  ;;  %176 = vadd.xlane.f32.xlu0 %v175_v37  ;;  %v556_v38 = vand.u32 2147483647, %v552_v45 }
  0xa0   :  { %v117_v41 = vpop.f32.mrf.mxu1  ;;  %v97_v42 = vpop.f32.mrf.mxu0 }
  0xa1   :  { %v118_v43 = vadd.f32 %v117_v41, %v97_v42 }
  0xa3   :  { %v251_v54 = vperm.slane %v118_v43, 0  ;;  %v473_v55 = vperm.slane %v118_v43, 1 }
  0xa8   :  { %v143_v44 = vpop.f32.mrf.mxu2  ;;  %v163_v46 = vpop.f32.mrf.mxu3 }
  0xa9   :  { %v164_v49 = vadd.f32 %v163_v46, %v143_v44  ;;  %v562_v46 = vmul.f32 0.6931472, %v700_v39 }
  0xab   :  { %v187_v51 = vperm.slane %v164_v49, 0  ;;  %v411_v52 = vperm.slane %v164_v49, 1 }
  0xad   :  { %v188_v56 = vmul.f32 %v187_v51, %v929_v48  ;;  %v1004_v57 = vmul.f32 %v187_v51, %v939_v53  ;;  %v412_v58 = vmul.f32 %v924_v47, %v411_v52  ;;  %v414_v59 = vmul.f32 %v960_v2, %v411_v52 }
  0xae   :  { %v189_v60 = vmul.f32 %v187_v51, %v895_v34  ;;  %v413_v63 = vmul.f32 %v955_v0, %v411_v52  ;;  %v415_v34 = vmul.f32 %v971_v8, %v411_v52  ;;  %v1020_v3 = vmul.f32 %v187_v51, %v976_v9 }
  0xaf   :  { %659 = vmatmul.msk.f32.vlgmr.msrb.gmra.mxu0 %vm192_vm1, %v188_v56  ;;  %661 = vmatmul.msk.f32.vlgmr.msrb.gmra.mxu2 %vm192_vm1, %v1004_v57  ;;  %v474_v61 = vmul.f32 %v473_v55, %v412_v58  ;;  %v252_v62 = vmul.f32 %v251_v54, %v188_v56  ;;  %v254_v6 = vmul.f32 %v251_v54, %v1004_v57  ;;  %v335_v2 = vand.u32 2147483647, %v331_v22 }
  0xb0   :  { %667 = vmatmul.msk.f32.vlgmr.msrb.gmra.mxu1 %vm192_vm1, %v412_v58  ;;  %669 = vmatmul.msk.f32.vlgmr.msrb.gmra.mxu3 %vm192_vm1, %v414_v59  ;;  %v253_v48 = vmul.f32 %v251_v54, %v189_v60  ;;  %v477_v4 = vmul.f32 %v473_v55, %v415_v34  ;;  %v475_v5 = vmul.f32 %v473_v55, %v413_v63  ;;  %v571_v51 = vsel %vm192_vm1, %v562_v46, 0.0 }
  0xb1   :  { %v478_v53 = vsel %vm192_vm1, %v474_v61, 0.0  ;;  %v256_v47 = vsel %vm192_vm1, %v252_v62, 0.0  ;;  %v262_v10 = vsel %vm192_vm1, %v254_v6, 0.0  ;;  %v255_v11 = vmul.f32 %v251_v54, %v1020_v3  ;;  %v293_v61 = vpop.xlane.xlu2 %292 }
  0xb2   :  { %479 = vadd.xlane.f32.xlu1 %v478_v53  ;;  %v259_v1 = vsel %vm192_vm1, %v253_v48, 0.0  ;;  %257 = vadd.xlane.f32.xlu2 %v256_v47  ;;  %v487_v0 = vsel %vm247_vm2, %v477_v4, 0.0  ;;  %v481_v7 = vsel %vm192_vm1, %v475_v5, 0.0  ;;  %v476_v12 = vmul.f32 %v473_v55, %v414_v59 }
  0xb3   :  { %260 = vadd.xlane.f32.xlu0 %v259_v1  ;;  %v265_v13 = vsel %vm247_vm2, %v255_v11, 0.0  ;;  %701 = vlog2.f32 %v335_v2 }
  0xb4   :  { %v484_v14 = vsel %vm192_vm1, %v476_v12, 0.0  ;;  %703 = vlog2.f32 %v556_v38 }
  0xb7   :  { %660 = vmatmul.msk.f32.gmra.mxu0 %vm192_vm1, %v189_v60  ;;  %662 = vmatmul.msk.f32.gmra.mxu2 %vm192_vm1, %v1020_v3 }
  0xb8   :  { %668 = vmatmul.msk.f32.gmra.mxu1 %vm192_vm1, %v413_v63  ;;  %670 = vmatmul.msk.f32.gmra.mxu3 %vm192_vm1, %v415_v34 }
  0xb9   :  { %v702_v40 = vpop.eup %701  ;;  %v1057_v53 = vpop.xlane.xlu2 %514 }
  0xba   :  { %488 = vadd.xlane.f32.xlu1 %v487_v0  ;;  %482 = vadd.xlane.f32.xlu2 %v481_v7  ;;  %v343_v50 = vmul.f32 0.6931472, %v702_v40  ;;  %v704_v54 = vpop.eup %703 }
  0xbb   :  { %263 = vadd.xlane.f32.xlu0 %v262_v10 }
  0xbc   :  { %v353_v52 = vsel %vm247_vm2, %v343_v50, 0.0 }
  0xc2   :  { %266 = vadd.xlane.f32.xlu2 %v265_v13 }
  0xc3   :  { %485 = vadd.xlane.f32.xlu0 %v484_v14 }
 0x12c   :  { %v222_v17 = vpop.f32.mrf.mxu0 }
 0x12d   :  { %v234_v18 = vmul.f32 %v222_v17, %v188_v56  ;;  %v445_v19 = vpop.f32.mrf.mxu1  ;;  %v564_v56 = vmul.f32 0.6931472, %v704_v54  ;;  %v299_v54 = vmul.f32 0.01, %v293_v61 }
 0x12e   :  { %v457_v23 = vmul.f32 %v445_v19, %v412_v58  ;;  %v287_v58 = vpop.xlane.xlu0 %286 }
 0x12f   :  { %v238_v20 = vsel %vm192_vm1, %v234_v18, 0.0 }
 0x130   :  { %239 = vadd.xlane.f32.xlu1 %v238_v20  ;;  %v461_v31 = vsel %vm192_vm1, %v457_v23, 0.0 }
 0x132   :  { %v228_v9 = vpop.f32.mrf.mxu2 }
 0x133   :  { %v451_v24 = vpop.f32.mrf.mxu3  ;;  %v236_v8 = vmul.f32 %v228_v9, %v1004_v57  ;;  %v574_v57 = vsel %vm247_vm2, %v564_v56, 0.0 }
 0x134   :  { %v459_v27 = vmul.f32 %v451_v24, %v414_v59  ;;  %v225_v28 = vpop.f32.mrf.mxu0  ;;  %v509_v59 = vpop.xlane.xlu1 %508 }
 0x135   :  { %v235_v29 = vmul.f32 %v225_v28, %v189_v60  ;;  %v448_v33 = vpop.f32.mrf.mxu1  ;;  %v244_v42 = vsel %vm192_vm1, %v236_v8, 0.0  ;;  %v297_v8 = vmul.f32 0.01, %v287_v58 }
 0x136   :  { %v467_v30 = vsel %vm192_vm1, %v459_v27, 0.0  ;;  %v458_v35 = vmul.f32 %v448_v33, %v413_v63  ;;  %v1053_v60 = vpop.xlane.xlu0 %289 }
 0x137   :  { %468 = vadd.xlane.f32.xlu0 %v467_v30  ;;  %v241_v32 = vsel %vm192_vm1, %v235_v29, 0.0  ;;  %v305_v6 = vadd.f32 %v1053_v60, %v287_v58 }
 0x138   :  { %462 = vadd.xlane.f32.xlu1 %v461_v31  ;;  %242 = vadd.xlane.f32.xlu2 %v241_v32  ;;  %v464_v43 = vsel %vm192_vm1, %v458_v35, 0.0 }
 0x139   :  { %v306_v0 = vadd.f32 %v305_v6, %v293_v61 }
 0x13a   :  { %v231_v44 = vpop.f32.mrf.mxu2 }
 0x13b   :  { %v454_v36 = vpop.f32.mrf.mxu3  ;;  %v237_v49 = vmul.f32 %v231_v44, %v1020_v3 }
 0x13c   :  { %v460_v37 = vmul.f32 %v454_v36, %v415_v34  ;;  %v512_v62 = vpop.xlane.xlu1 %511  ;;  %v349_v34 = vpop.xlane.xlu2 %348 }
 0x13d   :  { %v248_v55 = vsel %vm247_vm2, %v237_v49, 0.0  ;;  %v527_v14 = vadd.f32 %v512_v62, %v509_v59  ;;  %v357_v6 = vmul.f32 0.03125, %v349_v34 }
 0x13e   :  { %v470_v41 = vsel %vm247_vm2, %v460_v37, 0.0  ;;  %v1055_v48 = vpop.xlane.xlu0 %295 }
 0x13f   :  { %471 = vadd.xlane.f32.xlu0 %v470_v41  ;;  %v308_v10 = vsel %vm307_vm3, %v1055_v48, 0.0  ;;  %v528_v16 = vadd.f32 %v527_v14, %v1057_v53 }
 0x140   :  { %245 = vadd.xlane.f32.xlu1 %v244_v42  ;;  %465 = vadd.xlane.f32.xlu2 %v464_v43  ;;  %v309_v13 = vadd.f32 %v308_v10, %v306_v0  ;;  %v298_v10 = vmul.f32 0.01, %v1053_v60 }
 0x142   :  { %v310_v15 = vrot.slane %v309_v13, 4 }
 0x144   :  { %v1059_v47 = vpop.xlane.xlu1 %517  ;;  %v1063_v4 = vpop.xlane.xlu2 %351  ;;  %v311_v20 = vadd.f32 %v310_v15, %v309_v13 }
 0x145   :  { %v529_v17 = vsel %vm307_vm3, %v1059_v47, 0.0 }
 0x146   :  { %v1061_v63 = vpop.xlane.xlu0 %566  ;;  %v530_v21 = vadd.f32 %v529_v17, %v528_v16  ;;  %v312_v23 = vrot.slane %v311_v20, 2  ;;  %v361_v17 = vadd.f32 1.0, %v357_v6 }
 0x147   :  { %572 = vadd.xlane.f32.xlu0 %v571_v51 }
 0x148   :  { %249 = vadd.xlane.f32.xlu2 %v248_v55  ;;  %354 = vadd.xlane.f32.xlu1 %v353_v52  ;;  %v531_v24 = vrot.slane %v530_v21, 4  ;;  %v313_v25 = vadd.f32 %v312_v23, %v311_v20  ;;  %v519_v52 = vmul.f32 0.01, %v509_v59  ;;  %v520_v55 = vmul.f32 0.01, %v512_v62 }
 0x149   :  { %v522_v59 = vmul.f32 0.01, %v1059_v47 }
 0x14a   :  { %v532_v28 = vadd.f32 %v531_v24, %v530_v21  ;;  %v314_v31 = vrot.slane %v313_v25, 1 }
 0x14c   :  { %v346_v1 = vpop.xlane.xlu1 %345  ;;  %v258_v11 = vpop.xlane.xlu2 %257  ;;  %v533_v33 = vrot.slane %v532_v28, 2  ;;  %v1076_v36 = vadd.f32 %v314_v31, %v313_v25 }
 0x14d   :  { %v268_v26 = vmul.f32 2.0, %v258_v11  ;;  %v356_v46 = vmul.f32 0.03125, %v346_v1  ;;  %v521_v1 = vmul.f32 0.01, %v1057_v53  ;;  %v358_v53 = vmul.f32 0.03125, %v1063_v4 }
 0x14e   :  { %v177_v3 = vpop.xlane.xlu0 %176  ;;  %v534_v40 = vadd.f32 %v533_v33, %v532_v28  ;;  %vm316_vm4 = vcmp.gt.f32.partialorder %v1076_v36, 0.0 }
 0x14f   :  { %v1073_v9 = vperm.slane %v177_v3, 0  ;;  %v498_v50 = vperm.slane %v177_v3, 1  ;;  %v360_v3 = vadd.f32 1.0, %v356_v46 }
 0x150   :  { %575 = vadd.xlane.f32.xlu2 %v574_v57  ;;  %v535_v58 = vrot.slane %v534_v40, 1 }
 0x152   :  { %v536_v34 = vadd.f32 %v535_v58, %v534_v40 }
 0x154   :  { %v1065_v5 = vpop.xlane.xlu1 %569  ;;  %v483_v19 = vpop.xlane.xlu2 %482  ;;  %vm537_vm6 = vcmp.gt.f32.partialorder %v536_v34, 0.0 }
 0x155   :  { %v491_v13 = vmul.f32 2.0, %v483_v19  ;;  %v578_v46 = vmul.f32 0.03125, %v1065_v5  ;;  %v300_v5 = vmul.f32 0.01, %v1055_v48 }
 0x156   :  { %v261_v7 = vpop.xlane.xlu0 %260 }
 0x157   :  { %v269_v38 = vmul.f32 2.0, %v261_v7 }
 0x15c   :  { %v480_v12 = vpop.xlane.xlu1 %479  ;;  %v1071_v2 = vpop.xlane.xlu2 %266 }
 0x15d   :  { %v490_v37 = vmul.f32 2.0, %v480_v12  ;;  %v271_v40 = vmul.f32 2.0, %v1071_v2 }
 0x15e   :  { %v264_v18 = vpop.xlane.xlu0 %263 }
 0x15f   :  { %v270_v62 = vmul.f32 2.0, %v264_v18 }
 0x164   :  { %v489_v22 = vpop.xlane.xlu1 %488 }
 0x165   :  { %v493_v61 = vmul.f32 2.0, %v489_v22 }
 0x166   :  { %v486_v27 = vpop.xlane.xlu0 %485 }
 0x167   :  { %v492_v35 = vmul.f32 2.0, %v486_v27 }
 0x1a3   :  { %v240_v29 = vpop.xlane.xlu1 %239 }
 0x1a4   :  { %v272_v30 = vsub.f32 %v240_v29, %v268_v26 }
 0x1a6   :  { %v277_v32 = vadd.f32 %v1073_v9, %v272_v30 }
 0x1a8   :  { %v281_v45 = vmul.f32 0.00390625, %v277_v32 }
 0x1aa   :  { %v469_v39 = vpop.xlane.xlu0 %468  ;;  %v301_v41 = vadd.f32 %v297_v8, %v281_v45 }
 0x1ab   :  { %v496_v42 = vsub.f32 %v469_v39, %v492_v35  ;;  %v463_v43 = vpop.xlane.xlu1 %462  ;;  %v243_v44 = vpop.xlane.xlu2 %242  ;;  %v577_v39 = vmul.f32 0.03125, %v1061_v63 }
 0x1ac   :  { %v494_v49 = vsub.f32 %v463_v43, %v490_v37  ;;  %v273_v51 = vsub.f32 %v243_v44, %v269_v38  ;;  %v319_v0 = vsel %vm316_vm4, %v301_v41, 0.0  ;;  %v362_v44 = vadd.f32 1.0, %v358_v53 }
 0x1ad   :  { %v501_v7 = vadd.f32 %v498_v50, %v496_v42  ;;  %v384_v14 = vmul.f32 %v360_v3, %v319_v0  ;;  %v365_v26 = vsel %vm364_vm5, %v319_v0, 0.0 }
 0x1ae   :  { %v499_v56 = vadd.f32 %v498_v50, %v494_v49  ;;  %v278_v57 = vadd.f32 %v1073_v9, %v273_v51 }
 0x1af   :  { %v505_v20 = vmul.f32 0.00390625, %v501_v7  ;;  %v388_v30 = vsel %vm364_vm5, %v384_v14, 0.0 }
 0x1b0   :  { %v282_v11 = vmul.f32 0.00390625, %v278_v57  ;;  %v503_v12 = vmul.f32 0.00390625, %v499_v56 }
 0x1b1   :  { %v525_v31 = vadd.f32 %v521_v1, %v505_v20 }
 0x1b2   :  { %v302_v15 = vadd.f32 %v298_v10, %v282_v11  ;;  %v472_v16 = vpop.xlane.xlu0 %471  ;;  %v523_v18 = vadd.f32 %v519_v52, %v503_v12  ;;  %v582_v10 = vadd.f32 1.0, %v578_v46 }
 0x1b3   :  { %v497_v21 = vsub.f32 %v472_v16, %v493_v61  ;;  %v246_v23 = vpop.xlane.xlu1 %245  ;;  %v466_v60 = vpop.xlane.xlu2 %465 }
 0x1b4   :  { %v320_v24 = vsel %vm316_vm4, %v302_v15, 0.0  ;;  %v274_v47 = vsub.f32 %v246_v23, %v270_v62  ;;  %v495_v22 = vsub.f32 %v466_v60, %v491_v13  ;;  %v540_v37 = vsel %vm537_vm6, %v523_v18, 0.0 }
 0x1b5   :  { %v385_v25 = vmul.f32 %v361_v17, %v320_v24  ;;  %v502_v19 = vadd.f32 %v498_v50, %v497_v21  ;;  %v366_v29 = vsel %vm364_vm5, %v320_v24, 0.0  ;;  %v585_v58 = vsel %vm364_vm5, %v540_v37, 0.0 }
 0x1b6   :  { %v279_v27 = vadd.f32 %v1073_v9, %v274_v47  ;;  %v500_v28 = vadd.f32 %v498_v50, %v495_v22  ;;  %v367_v4 = vadd.f32 %v366_v29, %v365_v26  ;;  %v542_v50 = vsel %vm537_vm6, %v525_v31, 0.0 }
 0x1b7   :  { %v506_v32 = vmul.f32 0.00390625, %v502_v19  ;;  %v389_v33 = vsel %vm364_vm5, %v385_v25, 0.0  ;;  %v588_v1 = vsel %vm364_vm5, %v542_v50, 0.0 }
 0x1b8   :  { %v283_v45 = vmul.f32 0.00390625, %v279_v27  ;;  %v504_v8 = vmul.f32 0.00390625, %v500_v28  ;;  %v390_v35 = vadd.f32 %v389_v33, %v388_v30 }
 0x1b9   :  { %v526_v38 = vadd.f32 %v522_v59, %v506_v32  ;;  %v581_v59 = vadd.f32 1.0, %v577_v39 }
 0x1ba   :  { %v303_v41 = vadd.f32 %v299_v54, %v283_v45  ;;  %v524_v42 = vadd.f32 %v520_v55, %v504_v8  ;;  %v573_v43 = vpop.xlane.xlu0 %572 }
 0x1bb   :  { %v250_v49 = vpop.xlane.xlu2 %249  ;;  %v355_v51 = vpop.xlane.xlu1 %354  ;;  %v579_v56 = vmul.f32 0.03125, %v573_v43  ;;  %v543_v2 = vsel %vm537_vm6, %v526_v38, 0.0  ;;  %v603_v17 = vmul.f32 %v581_v59, %v540_v37 }
 0x1bc   :  { %v541_v52 = vsel %vm537_vm6, %v524_v42, 0.0  ;;  %v275_v57 = vsub.f32 %v250_v49, %v271_v40  ;;  %v359_v63 = vmul.f32 0.03125, %v355_v51  ;;  %v321_v55 = vsel %vm316_vm4, %v303_v41, 0.0 }
 0x1bd   :  { %v586_v54 = vsel %vm364_vm5, %v541_v52, 0.0  ;;  %v368_v7 = vsel %vm364_vm5, %v321_v55, 0.0  ;;  %v386_v11 = vmul.f32 %v362_v44, %v321_v55  ;;  %v590_v12 = vsel %vm370_vm7, %v543_v2, 0.0 }
 0x1be   :  { %v280_v6 = vadd.f32 %v1073_v9, %v275_v57  ;;  %v587_v0 = vadd.f32 %v586_v54, %v585_v58  ;;  %v369_v3 = vadd.f32 %v368_v7, %v367_v4  ;;  %v604_v13 = vmul.f32 %v582_v10, %v541_v52 }
 0x1bf   :  { %v583_v14 = vadd.f32 1.0, %v579_v56  ;;  %v363_v15 = vadd.f32 1.0, %v359_v63  ;;  %v391_v48 = vsel %vm364_vm5, %v386_v11, 0.0  ;;  %v607_v19 = vsel %vm364_vm5, %v603_v17, 0.0 }
 0x1c0   :  { %v284_v61 = vmul.f32 0.00390625, %v280_v6  ;;  %v589_v62 = vadd.f32 %v588_v1, %v587_v0  ;;  %v392_v34 = vadd.f32 %v391_v48, %v390_v35  ;;  %v608_v47 = vsel %vm364_vm5, %v604_v13, 0.0 }
 0x1c1   :  { %v605_v60 = vmul.f32 %v583_v14, %v542_v50  ;;  %v609_v28 = vadd.f32 %v608_v47, %v607_v19 }
 0x1c2   :  { %v304_v16 = vadd.f32 %v300_v5, %v284_v61  ;;  %v591_v9 = vadd.f32 %v590_v12, %v589_v62 }
 0x1c3   :  { %v576_v20 = vpop.xlane.xlu2 %575  ;;  %v610_v36 = vsel %vm364_vm5, %v605_v60, 0.0 }
 0x1c4   :  { %v322_v21 = vsel %vm316_vm4, %v304_v16, 0.0  ;;  %v580_v23 = vmul.f32 0.03125, %v576_v20  ;;  %592 = vadd.xlane.f32.xlu2 %v591_v9  ;;  %v611_v30 = vadd.f32 %v610_v36, %v609_v28 }
 0x1c5   :  { %v387_v53 = vmul.f32 %v363_v15, %v322_v21  ;;  %v371_v24 = vsel %vm370_vm7, %v322_v21, 0.0 }
 0x1c6   :  { %v584_v22 = vadd.f32 1.0, %v580_v23  ;;  %v372_v18 = vadd.f32 %v371_v24, %v369_v3 }
 0x1c7   :  { %v393_v25 = vsel %vm370_vm7, %v387_v53, 0.0 }
 0x1c8   :  { %v606_v26 = vmul.f32 %v584_v22, %v543_v2  ;;  %373 = vadd.xlane.f32.xlu0 %v372_v18  ;;  %v394_v27 = vadd.f32 %v393_v25, %v392_v34 }
 0x1ca   :  { %395 = vadd.xlane.f32.xlu1 %v394_v27  ;;  %v612_v29 = vsel %vm370_vm7, %v606_v26, 0.0 }
 0x1cb   :  { %v613_v31 = vadd.f32 %v612_v29, %v611_v30 }
 0x1d0   :  { %614 = vadd.xlane.f32.xlu0 %v613_v31 }
 0x237   :  { %v593_v32 = vpop.xlane.xlu2 %592 }
 0x238   :  { %v594_v4 = vrot.slane %v593_v32, 4 }
 0x23a   :  { %v595_v33 = vadd.f32 %v594_v4, %v593_v32 }
 0x23b   :  { %v374_v45 = vpop.xlane.xlu0 %373 }
 0x23c   :  { %v375_v8 = vrot.slane %v374_v45, 4  ;;  %v596_v35 = vrot.slane %v595_v33, 2 }
 0x23d   :  { %v396_v37 = vpop.xlane.xlu1 %395 }
 0x23e   :  { %v376_v38 = vadd.f32 %v375_v8, %v374_v45  ;;  %v397_v39 = vrot.slane %v396_v37, 4  ;;  %v597_v42 = vadd.f32 %v596_v35, %v595_v33 }
 0x240   :  { %v377_v40 = vrot.slane %v376_v38, 2  ;;  %v398_v41 = vadd.f32 %v397_v39, %v396_v37  ;;  %v598_v52 = vrot.slane %v597_v42, 1 }
 0x242   :  { %v399_v43 = vrot.slane %v398_v41, 2  ;;  %v378_v44 = vadd.f32 %v377_v40, %v376_v38  ;;  %v599_v54 = vadd.f32 %v598_v52, %v597_v42 }
 0x243   :  { %v615_v46 = vpop.xlane.xlu0 %614 }
 0x244   :  { %v400_v50 = vadd.f32 %v399_v43, %v398_v41  ;;  %v616_v49 = vrot.slane %v615_v46, 4  ;;  %v379_v51 = vrot.slane %v378_v44, 1 }
 0x246   :  { %v617_v56 = vadd.f32 %v616_v49, %v615_v46  ;;  %v380_v57 = vadd.f32 %v379_v51, %v378_v44  ;;  %v401_v58 = vrot.slane %v400_v50, 1 }
 0x248   :  { %v618_v63 = vrot.slane %v617_v56, 2  ;;  %679 = vpush %v380_v57  ;;  %v402_v2 = vadd.f32 %v401_v58, %v400_v50 }
 0x24a   :  { %v619_v55 = vadd.f32 %v618_v63, %v617_v56  ;;  %681 = vpush %v402_v2 }
 0x24b   :  { %683 = vpush %v599_v54 }
 0x24c   :  { %v620_v5 = vrot.slane %v619_v55, 1 }
 0x24e   :  { %v621_v6 = vadd.f32 %v620_v5, %v619_v55 }
 0x250   :  { %685 = vpush %v621_v6 }
 0x279   :  { %s680_s6 = spop %679 }
 0x27a   :  { %v382_v0 = vstv %s680_s6 }
 0x27b   :  { %s682_s25 = spop %681 }
 0x27c   :  { %s684_s27 = spop %683  ;;  %v404_v1 = vstv %s682_s25 }
 0x27d   :  { %v601_v7 = vstv %s684_s27 }
 0x27e   :  { %v602_v10 = vadd.f32 %v601_v7, %v382_v0 }
 0x280   :  { %625 = vst [vmem:[#allocation2] sm:$0x1] %v602_v10 }
 0x281   :  { %s686_s12 = spop %685 }
 0x282   :  { %v623_v3 = vstv %s686_s12  ;;  %637 = dma.vmem_to_hbm [thread:$0]  %s633_s29, 16, %s635_s0, [#allocation3]  }
 0x283   :  { %v624_v11 = vadd.f32 %v623_v3, %v404_v1 }
 0x285   :  { %626 = vst [vmem:[#allocation4] sm:$0x1] %v624_v11 }
 0x286   :  { %648 = dma.vmem_to_hbm [thread:$0]  %s644_s9, 16, %s646_s11, [#allocation5]  }
 0x287   :  { %753 = dma.done.wait [#allocation3], 16  }
 0x288   :  { %754 = vsyncadd [#allocation3], 4294967280 }
 0x289   :  { %755 = dma.done.wait [#allocation5], 16  }
 0x28a   :  { %756 = vsyncadd [#allocation5], 4294967280 }
 0x28b   :  { %657 = vsyncpa [#allocation3], 1 }
 0x28c   :  { %658 = vsyncpa [#allocation5], 1 }

// kernel: tpu_custom_call.1
= control target key start
LH: loop header
LB: loop body
LE: loop exit
PB: predicated region body
PF: predicated region fallthrough
CT: control target
= control target key end

     0   :  { %14 = vsyncpa [#allocation3], 0  ;;  %vm36_vm0 = vcmask 1041408   ;;  %s1124_s0 = inlined_call_operand.vmem [shape: f32[2,32], index: 0, kind: input, shape index: {}]   ;;  %s1125_s1 = inlined_call_operand.vmem [shape: f32[2,30,32], index: 1, kind: input, shape index: {}]   ;;  %s1126_s2 = inlined_call_operand.vmem [shape: f32[2,256], index: 2, kind: input, shape index: {}]   ;;  %s1127_s3 = inlined_call_operand.vmem [shape: f32[2,256], index: 3, kind: input, shape index: {}]   ;;  %s1128_s4 = inlined_call_operand.vmem [shape: f32[1,256], index: 4, kind: input, shape index: {}]   ;;  %s1129_s5 = inlined_call_operand.vmem [shape: f32[256,32], index: 5, kind: input, shape index: {}]   ;;  %s1130_s6 = inlined_call_operand.vmem [shape: f32[32,32], index: 6, kind: input, shape index: {}]   ;;  %s1131_s7 = inlined_call_operand.hbm [shape: f32[1,128], index: 7, kind: output, shape index: {0}]   ;;  %s1132_s8 = inlined_call_operand.hbm [shape: f32[1,128], index: 8, kind: output, shape index: {1}]  }
   0x1   :  { %v57_v0 = vld [vmem:[%s1129_s5 + $0x78] sm:$0xff]  ;;  %v56_v2 = vld [vmem:[%s1129_s5 + $0x70] sm:$0xff]  ;;  %v55_v4 = vld [vmem:[%s1129_s5 + $0x68] sm:$0xff] }
   0x2   :  { %v73_v1 = vld [vmem:[%s1129_s5 + $0xf8] sm:$0xff]  ;;  %126 = vmatpush.msra.mxu2 %v57_v0  ;;  %v72_v3 = vld [vmem:[%s1129_s5 + $0xf0] sm:$0xff]  ;;  %v71_v5 = vld [vmem:[%s1129_s5 + $0xe8] sm:$0xff]  ;;  %80 = vmatpush.msra.mxu0 %v57_v0 }
   0x3   :  { %146 = vmatpush.msra.mxu3 %v73_v1  ;;  %100 = vmatpush.msra.mxu1 %v73_v1  ;;  %v54_v6 = vld [vmem:[%s1129_s5 + $0x60] sm:$0xff]  ;;  %v53_v8 = vld [vmem:[%s1129_s5 + $0x58] sm:$0xff]  ;;  %v52_v10 = vld [vmem:[%s1129_s5 + $0x50] sm:$0xff] }
   0x4   :  { %127 = vmatpush.msra.mxu2 %v56_v2  ;;  %v70_v7 = vld [vmem:[%s1129_s5 + $0xe0] sm:$0xff]  ;;  %81 = vmatpush.msra.mxu0 %v56_v2  ;;  %v69_v9 = vld [vmem:[%s1129_s5 + $0xd8] sm:$0xff]  ;;  %v68_v11 = vld [vmem:[%s1129_s5 + $0xd0] sm:$0xff] }
   0x5   :  { %147 = vmatpush.msra.mxu3 %v72_v3  ;;  %101 = vmatpush.msra.mxu1 %v72_v3  ;;  %v51_v12 = vld [vmem:[%s1129_s5 + $0x48] sm:$0xff]  ;;  %v31_v14 = vld [vmem:[%s1128_s4] sm:$0x3]  ;;  %v49_v19 = vld [vmem:[%s1129_s5 + $0x38] sm:$0xff] }
   0x6   :  { %128 = vmatpush.msra.mxu2 %v55_v4  ;;  %82 = vmatpush.msra.mxu0 %v55_v4  ;;  %v67_v13 = vld [vmem:[%s1129_s5 + $0xc8] sm:$0xff]  ;;  %v50_v15 = vld [vmem:[%s1129_s5 + $0x40] sm:$0xff]  ;;  %v33_v17 = vperm.slane %v31_v14, 0  ;;  %v34_v18 = vperm.slane %v31_v14, 1  ;;  %v65_v20 = vld [vmem:[%s1129_s5 + $0xb8] sm:$0xff] }
   0x7   :  { %148 = vmatpush.msra.mxu3 %v71_v5  ;;  %102 = vmatpush.msra.mxu1 %v71_v5  ;;  %v66_v16 = vld [vmem:[%s1129_s5 + $0xc0] sm:$0xff] }
   0x8   :  { %129 = vmatpush.msra.mxu2 %v54_v6  ;;  %83 = vmatpush.msra.mxu0 %v54_v6  ;;  %v30_v21 = vld [vmem:[%s1126_s2] sm:$0xf]  ;;  %v35_v22 = vrot.slane %v34_v18, 6 }
   0x9   :  { %149 = vmatpush.msra.mxu3 %v70_v7  ;;  %103 = vmatpush.msra.mxu1 %v70_v7 }
   0xa   :  { %130 = vmatpush.msra.mxu2 %v53_v8  ;;  %84 = vmatpush.msra.mxu0 %v53_v8 }
   0xb   :  { %150 = vmatpush.msra.mxu3 %v69_v9  ;;  %104 = vmatpush.msra.mxu1 %v69_v9 }
   0xc   :  { %131 = vmatpush.msra.mxu2 %v52_v10  ;;  %85 = vmatpush.msra.mxu0 %v52_v10 }
   0xd   :  { %151 = vmatpush.msra.mxu3 %v68_v11  ;;  %105 = vmatpush.msra.mxu1 %v68_v11 }
   0xe   :  { %132 = vmatpush.msra.mxu2 %v51_v12  ;;  %86 = vmatpush.msra.mxu0 %v51_v12 }
   0xf   :  { %152 = vmatpush.msra.mxu3 %v67_v13  ;;  %106 = vmatpush.msra.mxu1 %v67_v13 }
  0x10   :  { %133 = vmatpush.msra.mxu2 %v50_v15 }
  0x11   :  { %153 = vmatpush.msra.mxu3 %v66_v16 }
  0x12   :  { %15 = vsyncpa [#allocation5], 0  ;;  %v48_v23 = vld [vmem:[%s1129_s5 + $0x30] sm:$0xff]  ;;  %87 = vmatpush.msra.mxu0 %v50_v15  ;;  %107 = vmatpush.msra.mxu1 %v66_v16  ;;  %v37_v25 = vsel %vm36_vm0, %v33_v17, %v35_v22  ;;  %v47_v27 = vld [vmem:[%s1129_s5 + $0x28] sm:$0xff]  ;;  %vm192_vm1 = vcmask 261120   ;;  %vm247_vm2 = vcmask 259072  }
  0x13   :  { %v64_v24 = vld [vmem:[%s1129_s5 + $0xb0] sm:$0xff]  ;;  %134 = vmatpush.msra.mxu2 %v49_v19  ;;  %154 = vmatpush.msra.mxu3 %v65_v20  ;;  %v39_v26 = vsub.f32 %v30_v21, %v37_v25  ;;  %v63_v28 = vld [vmem:[%s1129_s5 + $0xa8] sm:$0xff]  ;;  %v46_v29 = vld [vmem:[%s1129_s5 + $0x20] sm:$0xff]  ;;  %vm307_vm3 = vcmask 1045504   ;;  %vm364_vm5 = vcmask 7168   ;;  %vm370_vm7 = vcmask 5120  }
  0x14   :  { %88 = vmatpush.msra.mxu0 %v49_v19  ;;  %108 = vmatpush.msra.mxu1 %v65_v20  ;;  %v62_v30 = vld [vmem:[%s1129_s5 + $0xa0] sm:$0xff]  ;;  %v45_v32 = vld [vmem:[%s1129_s5 + $0x18] sm:$0xff]  ;;  %v895_v34 = vld [vmem:[%s1125_s1 + $0x8] sm:$0xff]  ;;  %s757_s28 = smov [#allocation2]   ;;  %s758_s30 = smov [#allocation4]  }
  0x15   :  { %135 = vmatpush.msra.mxu2 %v48_v23  ;;  %155 = vmatpush.msra.mxu3 %v64_v24  ;;  %75 = vst [vmem:[#allocation1] ss:$4 sm:$0xff] %v39_v26  ;;  %v40_v31 = vld [vmem:[%s1127_s3] sm:$0xf]  ;;  %v61_v33 = vld [vmem:[%s1129_s5 + $0x98] sm:$0xff]  ;;  %v44_v36 = vld [vmem:[%s1129_s5 + $0x10] sm:$0xff]  ;;  %v166_v54 = vmul.f32 %v39_v26, %v39_v26 }
  0x16   :  { %89 = vmatpush.msra.mxu0 %v48_v23  ;;  %109 = vmatpush.msra.mxu1 %v64_v24  ;;  %v41_v35 = vsub.f32 %v40_v31, %v37_v25  ;;  %v60_v37 = vld [vmem:[%s1129_s5 + $0x90] sm:$0xff]  ;;  %v182_v38 = vld [vmem:[%s1124_s0] sm:$0x3]  ;;  %v43_v39 = vld [vmem:[%s1129_s5 + $0x8] sm:$0xff]  ;;  %v324_v41 = vsub.f32 1.0, %v895_v34  ;;  %v288_v5 = vsel %vm192_vm1, %v895_v34, 0.0 }
  0x17   :  { %136 = vmatpush.msra.mxu2 %v47_v27  ;;  %156 = vmatpush.msra.mxu3 %v63_v28  ;;  %v59_v40 = vld [vmem:[%s1129_s5 + $0x88] sm:$0xff]  ;;  %v42_v44 = vld [vmem:[%s1129_s5] sm:$0xff]  ;;  %v916_v45 = vperm.slane %v182_v38, 0  ;;  %v932_v50 = vperm.slane %v182_v38, 1  ;;  %v939_v53 = vld [vmem:[%s1125_s1 + $0x10] sm:$0xff]  ;;  %s634_s0 = sshll.u32 %s1131_s7, 4  ;;  %s635_s0 = int_to_ptr.hbm [resolvable:$true] %s634_s0 }
  0x18   :  { %90 = vmatpush.msra.mxu0 %v47_v27  ;;  %110 = vmatpush.msra.mxu1 %v63_v28  ;;  %v58_v46 = vld [vmem:[%s1129_s5 + $0x80] sm:$0xff]  ;;  %v291_v58 = vsel %vm192_vm1, %v939_v53, 0.0  ;;  %v181_v60 = vld [vmem:[%s1130_s6 + $0x18] sm:$0xff]  ;;  %v955_v0 = vld [vmem:[%s1125_s1 + $0x28] sm:$0xff]  ;;  %v325_v21 = vsub.f32 1.0, %v939_v53  ;;  %s632_s29 = sshll.u32 %s757_s28, 4  ;;  %s633_s29 = int_to_ptr.vmem [resolvable:$true] %s632_s29 }
  0x19   :  { %137 = vmatpush.msra.mxu2 %v46_v29  ;;  %157 = vmatpush.msra.mxu3 %v62_v30  ;;  %v924_v47 = vld [vmem:[%s1125_s1 + $0x20] sm:$0xff]  ;;  %v329_v51 = vsub.f32 %v324_v41, %v916_v45  ;;  %v960_v2 = vld [vmem:[%s1125_s1 + $0x30] sm:$0xff]  ;;  %v510_v4 = vsel %vm192_vm1, %v955_v0, 0.0  ;;  %v971_v8 = vld [vmem:[%s1125_s1 + $0x38] sm:$0x3f]  ;;  %v545_v20 = vsub.f32 1.0, %v955_v0 }
  0x1a   :  { %91 = vmatpush.msra.mxu0 %v46_v29  ;;  %111 = vmatpush.msra.mxu1 %v62_v30  ;;  %v929_v48 = vld [vmem:[%s1125_s1] sm:$0xff]  ;;  %v544_v49 = vsub.f32 1.0, %v924_v47  ;;  %v507_v55 = vsel %vm192_vm1, %v924_v47, 0.0  ;;  %v513_v6 = vsel %vm192_vm1, %v960_v2, 0.0  ;;  %v976_v9 = vld [vmem:[%s1125_s1 + $0x18] sm:$0x3f]  ;;  %v330_v22 = vsub.f32 %v325_v21, %v916_v45 }
  0x1b   :  { %138 = vmatpush.msra.mxu2 %v45_v32  ;;  %158 = vmatpush.msra.mxu3 %v61_v33  ;;  %v323_v52 = vsub.f32 1.0, %v929_v48  ;;  %v285_v56 = vsel %vm192_vm1, %v929_v48, 0.0  ;;  %v333_v57 = vand.u32 2147483647, %v329_v51  ;;  %v516_v12 = vsel %vm247_vm2, %v971_v8, 0.0  ;;  %s643_s9 = sshll.u32 %s758_s30, 4  ;;  %s644_s9 = int_to_ptr.vmem [resolvable:$true] %s643_s9 }
  0x1c   :  { %v76_v42 = vld.sshfl [vmem:[#allocation1] sm:$0xff pattern:$0x73625140]  ;;  %v77_v43 = vld.sshfl [vmem:[#allocation1 + $0x8] sm:$0xff pattern:$0x73625140]  ;;  %92 = vmatpush.msra.mxu0 %v45_v32  ;;  %112 = vmatpush.msra.mxu1 %v61_v33  ;;  %v549_v59 = vsub.f32 %v544_v49, %v932_v50  ;;  %v550_v23 = vsub.f32 %v545_v20, %v932_v50 }
  0x1d   :  { %139 = vmatpush.msra.mxu2 %v44_v36  ;;  %159 = vmatpush.msra.mxu3 %v60_v37  ;;  %121 = vst [vmem:[#allocation1] ss:$4 sm:$0xff] %v41_v35  ;;  %v328_v63 = vsub.f32 %v323_v52, %v916_v45  ;;  %689 = vlog2.f32 %v333_v57  ;;  %v294_v13 = vsel %vm247_vm2, %v976_v9, 0.0  ;;  %v334_v24 = vand.u32 2147483647, %v330_v22  ;;  %v180_v35 = vld [vmem:[%s1130_s6 + $0x10] sm:$0xff] }
  0x1e   :  { %93 = vmatpush.msra.mxu0 %v44_v36  ;;  %113 = vmatpush.msra.mxu1 %v60_v37  ;;  %v553_v1 = vand.u32 2147483647, %v549_v59  ;;  %v554_v25 = vand.u32 2147483647, %v550_v23  ;;  %s645_s11 = sshll.u32 %s1132_s8, 4  ;;  %s646_s11 = int_to_ptr.hbm [resolvable:$true] %s645_s11 }
  0x1f   :  { %140 = vmatpush.msra.mxu2 %v43_v39  ;;  %160 = vmatpush.msra.mxu3 %v59_v40  ;;  %v332_v3 = vand.u32 2147483647, %v328_v63 }
  0x20   :  { %94 = vmatpush.msra.mxu0 %v43_v39  ;;  %114 = vmatpush.msra.mxu1 %v59_v40  ;;  %691 = vlog2.f32 %v553_v1  ;;  %v179_v39 = vld [vmem:[%s1130_s6 + $0x8] sm:$0xff]  ;;  %v178_v40 = vld [vmem:[%s1130_s6] sm:$0xff] }
  0x21   :  { %141 = vmatpush.msra.mxu2 %v42_v44  ;;  %161 = vmatpush.msra.mxu3 %v58_v46  ;;  %693 = vlog2.f32 %v332_v3 }
  0x22   :  { %95 = vmatpush.msra.mxu0 %v42_v44  ;;  %115 = vmatpush.msra.mxu1 %v58_v46  ;;  %695 = vlog2.f32 %v334_v24 }
  0x23   :  { %96 = vmatmul.f32.vlgmr.msra.gmra.mxu0 %v76_v42  ;;  %116 = vmatmul.f32.vlgmr.msra.gmra.mxu1 %v77_v43  ;;  %v690_v7 = vpop.eup %689  ;;  %697 = vlog2.f32 %v554_v25 }
  0x24   :  { %v122_v61 = vld.sshfl [vmem:[#allocation1] sm:$0xff pattern:$0x73625140]  ;;  %v123_v62 = vld.sshfl [vmem:[#allocation1 + $0x8] sm:$0xff pattern:$0x73625140]  ;;  %508 = vadd.xlane.f32.xlu1 %v507_v55  ;;  %286 = vadd.xlane.f32.xlu0 %v285_v56 }
  0x25   :  { %142 = vmatmul.f32.vlgmr.msra.gmra.mxu2 %v122_v61  ;;  %162 = vmatmul.f32.vlgmr.msra.gmra.mxu3 %v123_v62  ;;  %168 = vst [vmem:[#allocation1] ss:$4 sm:$0xff] %v166_v54  ;;  %v339_v10 = vmul.f32 0.6931472, %v690_v7 }
  0x26   :  { %292 = vadd.xlane.f32.xlu2 %v291_v58  ;;  %217 = vmatpush.msrb.mxu0 %v181_v60  ;;  %v692_v11 = vpop.eup %691 }
  0x27   :  { %671 = vmatpush.msrb.mxu2 %v181_v60  ;;  %440 = vmatpush.msrb.mxu1 %v181_v60  ;;  %v694_v14 = vpop.eup %693  ;;  %v347_v15 = vsel %vm192_vm1, %v339_v10, 0.0  ;;  %v558_v16 = vmul.f32 0.6931472, %v692_v11 }
  0x28   :  { %675 = vmatpush.msrb.mxu3 %v181_v60  ;;  %v337_v17 = vmul.f32 0.6931472, %v694_v14  ;;  %v696_v26 = vpop.eup %695  ;;  %218 = vmatpush.msrb.mxu0 %v180_v35 }
  0x29   :  { %v565_v18 = vsel %vm192_vm1, %v558_v16, 0.0  ;;  %v698_v29 = vpop.eup %697  ;;  %v341_v30 = vmul.f32 0.6931472, %v696_v26  ;;  %672 = vmatpush.msrb.mxu2 %v180_v35  ;;  %441 = vmatpush.msrb.mxu1 %v180_v35  ;;  %v326_v16 = vsub.f32 1.0, %v976_v9  ;;  %v547_v26 = vsub.f32 1.0, %v971_v8 }
  0x2a   :  { %v344_v19 = vsel %vm192_vm1, %v337_v17, 0.0  ;;  %v560_v33 = vmul.f32 0.6931472, %v698_v29  ;;  %676 = vmatpush.msrb.mxu3 %v180_v35  ;;  %219 = vmatpush.msrb.mxu0 %v179_v39 }
  0x2b   :  { %v350_v36 = vsel %vm192_vm1, %v341_v30, 0.0  ;;  %673 = vmatpush.msrb.mxu2 %v179_v39  ;;  %442 = vmatpush.msrb.mxu1 %v179_v39  ;;  %v331_v22 = vsub.f32 %v326_v16, %v916_v45  ;;  %v552_v45 = vsub.f32 %v547_v26, %v932_v50 }
  0x2c   :  { %511 = vadd.xlane.f32.xlu1 %v510_v4  ;;  %289 = vadd.xlane.f32.xlu0 %v288_v5  ;;  %v169_v27 = vld.sshfl [vmem:[#allocation1] sm:$0xff pattern:$0x73625140]  ;;  %v170_v28 = vld.sshfl [vmem:[#allocation1 + $0x8] sm:$0xff pattern:$0x73625140] }
  0x2d   :  { %v173_v31 = vsel %vm36_vm0, %v169_v27, 0.0  ;;  %v174_v32 = vsel %vm36_vm0, %v170_v28, 0.0  ;;  %v568_v38 = vsel %vm192_vm1, %v560_v33, 0.0  ;;  %677 = vmatpush.msrb.mxu3 %v179_v39  ;;  %220 = vmatpush.msrb.mxu0 %v178_v40 }
  0x2e   :  { %514 = vadd.xlane.f32.xlu2 %v513_v6  ;;  %v175_v37 = vadd.f32 %v174_v32, %v173_v31  ;;  %674 = vmatpush.msrb.mxu2 %v178_v40 }
  0x2f   :  { %443 = vmatpush.msrb.mxu1 %v178_v40  ;;  %678 = vmatpush.msrb.mxu3 %v178_v40 }
  0x34   :  { %517 = vadd.xlane.f32.xlu1 %v516_v12  ;;  %295 = vadd.xlane.f32.xlu0 %v294_v13 }
  0x36   :  { %348 = vadd.xlane.f32.xlu2 %v347_v15  ;;  %v546_v15 = vsub.f32 1.0, %v960_v2 }
  0x38   :  { %v551_v21 = vsub.f32 %v546_v15, %v932_v50 }
  0x3a   :  { %v555_v25 = vand.u32 2147483647, %v551_v21 }
  0x3c   :  { %566 = vadd.xlane.f32.xlu0 %v565_v18  ;;  %345 = vadd.xlane.f32.xlu1 %v344_v19  ;;  %699 = vlog2.f32 %v555_v25 }
  0x3e   :  { %351 = vadd.xlane.f32.xlu2 %v350_v36 }
  0x42   :  { %v700_v39 = vpop.eup %699 }
  0x44   :  { %569 = vadd.xlane.f32.xlu1 %v568_v38  ;;  %176 = vadd.xlane.f32.xlu0 %v175_v37  ;;  %v556_v38 = vand.u32 2147483647, %v552_v45 }
  0xa0   :  { %v117_v41 = vpop.f32.mrf.mxu1  ;;  %v97_v42 = vpop.f32.mrf.mxu0 }
  0xa1   :  { %v118_v43 = vadd.f32 %v117_v41, %v97_v42 }
  0xa3   :  { %v251_v54 = vperm.slane %v118_v43, 0  ;;  %v473_v55 = vperm.slane %v118_v43, 1 }
  0xa8   :  { %v143_v44 = vpop.f32.mrf.mxu2  ;;  %v163_v46 = vpop.f32.mrf.mxu3 }
  0xa9   :  { %v164_v49 = vadd.f32 %v163_v46, %v143_v44  ;;  %v562_v46 = vmul.f32 0.6931472, %v700_v39 }
  0xab   :  { %v187_v51 = vperm.slane %v164_v49, 0  ;;  %v411_v52 = vperm.slane %v164_v49, 1 }
  0xad   :  { %v188_v56 = vmul.f32 %v187_v51, %v929_v48  ;;  %v1004_v57 = vmul.f32 %v187_v51, %v939_v53  ;;  %v412_v58 = vmul.f32 %v924_v47, %v411_v52  ;;  %v414_v59 = vmul.f32 %v960_v2, %v411_v52 }
  0xae   :  { %v189_v60 = vmul.f32 %v187_v51, %v895_v34  ;;  %v413_v63 = vmul.f32 %v955_v0, %v411_v52  ;;  %v415_v34 = vmul.f32 %v971_v8, %v411_v52  ;;  %v1020_v3 = vmul.f32 %v187_v51, %v976_v9 }
  0xaf   :  { %659 = vmatmul.msk.f32.vlgmr.msrb.gmra.mxu0 %vm192_vm1, %v188_v56  ;;  %661 = vmatmul.msk.f32.vlgmr.msrb.gmra.mxu2 %vm192_vm1, %v1004_v57  ;;  %v474_v61 = vmul.f32 %v473_v55, %v412_v58  ;;  %v252_v62 = vmul.f32 %v251_v54, %v188_v56  ;;  %v254_v6 = vmul.f32 %v251_v54, %v1004_v57  ;;  %v335_v2 = vand.u32 2147483647, %v331_v22 }
  0xb0   :  { %667 = vmatmul.msk.f32.vlgmr.msrb.gmra.mxu1 %vm192_vm1, %v412_v58  ;;  %669 = vmatmul.msk.f32.vlgmr.msrb.gmra.mxu3 %vm192_vm1, %v414_v59  ;;  %v253_v48 = vmul.f32 %v251_v54, %v189_v60  ;;  %v477_v4 = vmul.f32 %v473_v55, %v415_v34  ;;  %v475_v5 = vmul.f32 %v473_v55, %v413_v63  ;;  %v571_v51 = vsel %vm192_vm1, %v562_v46, 0.0 }
  0xb1   :  { %v478_v53 = vsel %vm192_vm1, %v474_v61, 0.0  ;;  %v256_v47 = vsel %vm192_vm1, %v252_v62, 0.0  ;;  %v262_v10 = vsel %vm192_vm1, %v254_v6, 0.0  ;;  %v255_v11 = vmul.f32 %v251_v54, %v1020_v3  ;;  %v293_v61 = vpop.xlane.xlu2 %292 }
  0xb2   :  { %479 = vadd.xlane.f32.xlu1 %v478_v53  ;;  %v259_v1 = vsel %vm192_vm1, %v253_v48, 0.0  ;;  %257 = vadd.xlane.f32.xlu2 %v256_v47  ;;  %v487_v0 = vsel %vm247_vm2, %v477_v4, 0.0  ;;  %v481_v7 = vsel %vm192_vm1, %v475_v5, 0.0  ;;  %v476_v12 = vmul.f32 %v473_v55, %v414_v59 }
  0xb3   :  { %260 = vadd.xlane.f32.xlu0 %v259_v1  ;;  %v265_v13 = vsel %vm247_vm2, %v255_v11, 0.0  ;;  %701 = vlog2.f32 %v335_v2 }
  0xb4   :  { %v484_v14 = vsel %vm192_vm1, %v476_v12, 0.0  ;;  %703 = vlog2.f32 %v556_v38 }
  0xb7   :  { %660 = vmatmul.msk.f32.gmra.mxu0 %vm192_vm1, %v189_v60  ;;  %662 = vmatmul.msk.f32.gmra.mxu2 %vm192_vm1, %v1020_v3 }
  0xb8   :  { %668 = vmatmul.msk.f32.gmra.mxu1 %vm192_vm1, %v413_v63  ;;  %670 = vmatmul.msk.f32.gmra.mxu3 %vm192_vm1, %v415_v34 }
  0xb9   :  { %v702_v40 = vpop.eup %701  ;;  %v1057_v53 = vpop.xlane.xlu2 %514 }
  0xba   :  { %488 = vadd.xlane.f32.xlu1 %v487_v0  ;;  %482 = vadd.xlane.f32.xlu2 %v481_v7  ;;  %v343_v50 = vmul.f32 0.6931472, %v702_v40  ;;  %v704_v54 = vpop.eup %703 }
  0xbb   :  { %263 = vadd.xlane.f32.xlu0 %v262_v10 }
  0xbc   :  { %v353_v52 = vsel %vm247_vm2, %v343_v50, 0.0 }
  0xc2   :  { %266 = vadd.xlane.f32.xlu2 %v265_v13 }
  0xc3   :  { %485 = vadd.xlane.f32.xlu0 %v484_v14 }
 0x12c   :  { %v222_v17 = vpop.f32.mrf.mxu0 }
 0x12d   :  { %v234_v18 = vmul.f32 %v222_v17, %v188_v56  ;;  %v445_v19 = vpop.f32.mrf.mxu1  ;;  %v564_v56 = vmul.f32 0.6931472, %v704_v54  ;;  %v299_v54 = vmul.f32 0.01, %v293_v61 }
 0x12e   :  { %v457_v23 = vmul.f32 %v445_v19, %v412_v58  ;;  %v287_v58 = vpop.xlane.xlu0 %286 }
 0x12f   :  { %v238_v20 = vsel %vm192_vm1, %v234_v18, 0.0 }
 0x130   :  { %239 = vadd.xlane.f32.xlu1 %v238_v20  ;;  %v461_v31 = vsel %vm192_vm1, %v457_v23, 0.0 }
 0x132   :  { %v228_v9 = vpop.f32.mrf.mxu2 }
 0x133   :  { %v451_v24 = vpop.f32.mrf.mxu3  ;;  %v236_v8 = vmul.f32 %v228_v9, %v1004_v57  ;;  %v574_v57 = vsel %vm247_vm2, %v564_v56, 0.0 }
 0x134   :  { %v459_v27 = vmul.f32 %v451_v24, %v414_v59  ;;  %v225_v28 = vpop.f32.mrf.mxu0  ;;  %v509_v59 = vpop.xlane.xlu1 %508 }
 0x135   :  { %v235_v29 = vmul.f32 %v225_v28, %v189_v60  ;;  %v448_v33 = vpop.f32.mrf.mxu1  ;;  %v244_v42 = vsel %vm192_vm1, %v236_v8, 0.0  ;;  %v297_v8 = vmul.f32 0.01, %v287_v58 }
 0x136   :  { %v467_v30 = vsel %vm192_vm1, %v459_v27, 0.0  ;;  %v458_v35 = vmul.f32 %v448_v33, %v413_v63  ;;  %v1053_v60 = vpop.xlane.xlu0 %289 }
 0x137   :  { %468 = vadd.xlane.f32.xlu0 %v467_v30  ;;  %v241_v32 = vsel %vm192_vm1, %v235_v29, 0.0  ;;  %v305_v6 = vadd.f32 %v1053_v60, %v287_v58 }
 0x138   :  { %462 = vadd.xlane.f32.xlu1 %v461_v31  ;;  %242 = vadd.xlane.f32.xlu2 %v241_v32  ;;  %v464_v43 = vsel %vm192_vm1, %v458_v35, 0.0 }
 0x139   :  { %v306_v0 = vadd.f32 %v305_v6, %v293_v61 }
 0x13a   :  { %v231_v44 = vpop.f32.mrf.mxu2 }
 0x13b   :  { %v454_v36 = vpop.f32.mrf.mxu3  ;;  %v237_v49 = vmul.f32 %v231_v44, %v1020_v3 }
 0x13c   :  { %v460_v37 = vmul.f32 %v454_v36, %v415_v34  ;;  %v512_v62 = vpop.xlane.xlu1 %511  ;;  %v349_v34 = vpop.xlane.xlu2 %348 }
 0x13d   :  { %v248_v55 = vsel %vm247_vm2, %v237_v49, 0.0  ;;  %v527_v14 = vadd.f32 %v512_v62, %v509_v59  ;;  %v357_v6 = vmul.f32 0.03125, %v349_v34 }
 0x13e   :  { %v470_v41 = vsel %vm247_vm2, %v460_v37, 0.0  ;;  %v1055_v48 = vpop.xlane.xlu0 %295 }
 0x13f   :  { %471 = vadd.xlane.f32.xlu0 %v470_v41  ;;  %v308_v10 = vsel %vm307_vm3, %v1055_v48, 0.0  ;;  %v528_v16 = vadd.f32 %v527_v14, %v1057_v53 }
 0x140   :  { %245 = vadd.xlane.f32.xlu1 %v244_v42  ;;  %465 = vadd.xlane.f32.xlu2 %v464_v43  ;;  %v309_v13 = vadd.f32 %v308_v10, %v306_v0  ;;  %v298_v10 = vmul.f32 0.01, %v1053_v60 }
 0x142   :  { %v310_v15 = vrot.slane %v309_v13, 4 }
 0x144   :  { %v1059_v47 = vpop.xlane.xlu1 %517  ;;  %v1063_v4 = vpop.xlane.xlu2 %351  ;;  %v311_v20 = vadd.f32 %v310_v15, %v309_v13 }
 0x145   :  { %v529_v17 = vsel %vm307_vm3, %v1059_v47, 0.0 }
 0x146   :  { %v1061_v63 = vpop.xlane.xlu0 %566  ;;  %v530_v21 = vadd.f32 %v529_v17, %v528_v16  ;;  %v312_v23 = vrot.slane %v311_v20, 2  ;;  %v361_v17 = vadd.f32 1.0, %v357_v6 }
 0x147   :  { %572 = vadd.xlane.f32.xlu0 %v571_v51 }
 0x148   :  { %249 = vadd.xlane.f32.xlu2 %v248_v55  ;;  %354 = vadd.xlane.f32.xlu1 %v353_v52  ;;  %v531_v24 = vrot.slane %v530_v21, 4  ;;  %v313_v25 = vadd.f32 %v312_v23, %v311_v20  ;;  %v519_v52 = vmul.f32 0.01, %v509_v59  ;;  %v520_v55 = vmul.f32 0.01, %v512_v62 }
 0x149   :  { %v522_v59 = vmul.f32 0.01, %v1059_v47 }
 0x14a   :  { %v532_v28 = vadd.f32 %v531_v24, %v530_v21  ;;  %v314_v31 = vrot.slane %v313_v25, 1 }
 0x14c   :  { %v346_v1 = vpop.xlane.xlu1 %345  ;;  %v258_v11 = vpop.xlane.xlu2 %257  ;;  %v533_v33 = vrot.slane %v532_v28, 2  ;;  %v1076_v36 = vadd.f32 %v314_v31, %v313_v25 }
 0x14d   :  { %v268_v26 = vmul.f32 2.0, %v258_v11  ;;  %v356_v46 = vmul.f32 0.03125, %v346_v1  ;;  %v521_v1 = vmul.f32 0.01, %v1057_v53  ;;  %v358_v53 = vmul.f32 0.03125, %v1063_v4 }
 0x14e   :  { %v177_v3 = vpop.xlane.xlu0 %176  ;;  %v534_v40 = vadd.f32 %v533_v33, %v532_v28  ;;  %vm316_vm4 = vcmp.gt.f32.partialorder %v1076_v36, 0.0 }
 0x14f   :  { %v1073_v9 = vperm.slane %v177_v3, 0  ;;  %v498_v50 = vperm.slane %v177_v3, 1  ;;  %v360_v3 = vadd.f32 1.0, %v356_v46 }
 0x150   :  { %575 = vadd.xlane.f32.xlu2 %v574_v57  ;;  %v535_v58 = vrot.slane %v534_v40, 1 }
 0x152   :  { %v536_v34 = vadd.f32 %v535_v58, %v534_v40 }
 0x154   :  { %v1065_v5 = vpop.xlane.xlu1 %569  ;;  %v483_v19 = vpop.xlane.xlu2 %482  ;;  %vm537_vm6 = vcmp.gt.f32.partialorder %v536_v34, 0.0 }
 0x155   :  { %v491_v13 = vmul.f32 2.0, %v483_v19  ;;  %v578_v46 = vmul.f32 0.03125, %v1065_v5  ;;  %v300_v5 = vmul.f32 0.01, %v1055_v48 }
 0x156   :  { %v261_v7 = vpop.xlane.xlu0 %260 }
 0x157   :  { %v269_v38 = vmul.f32 2.0, %v261_v7 }
 0x15c   :  { %v480_v12 = vpop.xlane.xlu1 %479  ;;  %v1071_v2 = vpop.xlane.xlu2 %266 }
 0x15d   :  { %v490_v37 = vmul.f32 2.0, %v480_v12  ;;  %v271_v40 = vmul.f32 2.0, %v1071_v2 }
 0x15e   :  { %v264_v18 = vpop.xlane.xlu0 %263 }
 0x15f   :  { %v270_v62 = vmul.f32 2.0, %v264_v18 }
 0x164   :  { %v489_v22 = vpop.xlane.xlu1 %488 }
 0x165   :  { %v493_v61 = vmul.f32 2.0, %v489_v22 }
 0x166   :  { %v486_v27 = vpop.xlane.xlu0 %485 }
 0x167   :  { %v492_v35 = vmul.f32 2.0, %v486_v27 }
 0x1a3   :  { %v240_v29 = vpop.xlane.xlu1 %239 }
 0x1a4   :  { %v272_v30 = vsub.f32 %v240_v29, %v268_v26 }
 0x1a6   :  { %v277_v32 = vadd.f32 %v1073_v9, %v272_v30 }
 0x1a8   :  { %v281_v45 = vmul.f32 0.00390625, %v277_v32 }
 0x1aa   :  { %v469_v39 = vpop.xlane.xlu0 %468  ;;  %v301_v41 = vadd.f32 %v297_v8, %v281_v45 }
 0x1ab   :  { %v496_v42 = vsub.f32 %v469_v39, %v492_v35  ;;  %v463_v43 = vpop.xlane.xlu1 %462  ;;  %v243_v44 = vpop.xlane.xlu2 %242  ;;  %v577_v39 = vmul.f32 0.03125, %v1061_v63 }
 0x1ac   :  { %v494_v49 = vsub.f32 %v463_v43, %v490_v37  ;;  %v273_v51 = vsub.f32 %v243_v44, %v269_v38  ;;  %v319_v0 = vsel %vm316_vm4, %v301_v41, 0.0  ;;  %v362_v44 = vadd.f32 1.0, %v358_v53 }
 0x1ad   :  { %v501_v7 = vadd.f32 %v498_v50, %v496_v42  ;;  %v384_v14 = vmul.f32 %v360_v3, %v319_v0  ;;  %v365_v26 = vsel %vm364_vm5, %v319_v0, 0.0 }
 0x1ae   :  { %v499_v56 = vadd.f32 %v498_v50, %v494_v49  ;;  %v278_v57 = vadd.f32 %v1073_v9, %v273_v51 }
 0x1af   :  { %v505_v20 = vmul.f32 0.00390625, %v501_v7  ;;  %v388_v30 = vsel %vm364_vm5, %v384_v14, 0.0 }
 0x1b0   :  { %v282_v11 = vmul.f32 0.00390625, %v278_v57  ;;  %v503_v12 = vmul.f32 0.00390625, %v499_v56 }
 0x1b1   :  { %v525_v31 = vadd.f32 %v521_v1, %v505_v20 }
 0x1b2   :  { %v302_v15 = vadd.f32 %v298_v10, %v282_v11  ;;  %v472_v16 = vpop.xlane.xlu0 %471  ;;  %v523_v18 = vadd.f32 %v519_v52, %v503_v12  ;;  %v582_v10 = vadd.f32 1.0, %v578_v46 }
 0x1b3   :  { %v497_v21 = vsub.f32 %v472_v16, %v493_v61  ;;  %v246_v23 = vpop.xlane.xlu1 %245  ;;  %v466_v60 = vpop.xlane.xlu2 %465 }
 0x1b4   :  { %v320_v24 = vsel %vm316_vm4, %v302_v15, 0.0  ;;  %v274_v47 = vsub.f32 %v246_v23, %v270_v62  ;;  %v495_v22 = vsub.f32 %v466_v60, %v491_v13  ;;  %v540_v37 = vsel %vm537_vm6, %v523_v18, 0.0 }
 0x1b5   :  { %v385_v25 = vmul.f32 %v361_v17, %v320_v24  ;;  %v502_v19 = vadd.f32 %v498_v50, %v497_v21  ;;  %v366_v29 = vsel %vm364_vm5, %v320_v24, 0.0  ;;  %v585_v58 = vsel %vm364_vm5, %v540_v37, 0.0 }
 0x1b6   :  { %v279_v27 = vadd.f32 %v1073_v9, %v274_v47  ;;  %v500_v28 = vadd.f32 %v498_v50, %v495_v22  ;;  %v367_v4 = vadd.f32 %v366_v29, %v365_v26  ;;  %v542_v50 = vsel %vm537_vm6, %v525_v31, 0.0 }
 0x1b7   :  { %v506_v32 = vmul.f32 0.00390625, %v502_v19  ;;  %v389_v33 = vsel %vm364_vm5, %v385_v25, 0.0  ;;  %v588_v1 = vsel %vm364_vm5, %v542_v50, 0.0 }
 0x1b8   :  { %v283_v45 = vmul.f32 0.00390625, %v279_v27  ;;  %v504_v8 = vmul.f32 0.00390625, %v500_v28  ;;  %v390_v35 = vadd.f32 %v389_v33, %v388_v30 }
 0x1b9   :  { %v526_v38 = vadd.f32 %v522_v59, %v506_v32  ;;  %v581_v59 = vadd.f32 1.0, %v577_v39 }
 0x1ba   :  { %v303_v41 = vadd.f32 %v299_v54, %v283_v45  ;;  %v524_v42 = vadd.f32 %v520_v55, %v504_v8  ;;  %v573_v43 = vpop.xlane.xlu0 %572 }
 0x1bb   :  { %v250_v49 = vpop.xlane.xlu2 %249  ;;  %v355_v51 = vpop.xlane.xlu1 %354  ;;  %v579_v56 = vmul.f32 0.03125, %v573_v43  ;;  %v543_v2 = vsel %vm537_vm6, %v526_v38, 0.0  ;;  %v603_v17 = vmul.f32 %v581_v59, %v540_v37 }
 0x1bc   :  { %v541_v52 = vsel %vm537_vm6, %v524_v42, 0.0  ;;  %v275_v57 = vsub.f32 %v250_v49, %v271_v40  ;;  %v359_v63 = vmul.f32 0.03125, %v355_v51  ;;  %v321_v55 = vsel %vm316_vm4, %v303_v41, 0.0 }
 0x1bd   :  { %v586_v54 = vsel %vm364_vm5, %v541_v52, 0.0  ;;  %v368_v7 = vsel %vm364_vm5, %v321_v55, 0.0  ;;  %v386_v11 = vmul.f32 %v362_v44, %v321_v55  ;;  %v590_v12 = vsel %vm370_vm7, %v543_v2, 0.0 }
 0x1be   :  { %v280_v6 = vadd.f32 %v1073_v9, %v275_v57  ;;  %v587_v0 = vadd.f32 %v586_v54, %v585_v58  ;;  %v369_v3 = vadd.f32 %v368_v7, %v367_v4  ;;  %v604_v13 = vmul.f32 %v582_v10, %v541_v52 }
 0x1bf   :  { %v583_v14 = vadd.f32 1.0, %v579_v56  ;;  %v363_v15 = vadd.f32 1.0, %v359_v63  ;;  %v391_v48 = vsel %vm364_vm5, %v386_v11, 0.0  ;;  %v607_v19 = vsel %vm364_vm5, %v603_v17, 0.0 }
 0x1c0   :  { %v284_v61 = vmul.f32 0.00390625, %v280_v6  ;;  %v589_v62 = vadd.f32 %v588_v1, %v587_v0  ;;  %v392_v34 = vadd.f32 %v391_v48, %v390_v35  ;;  %v608_v47 = vsel %vm364_vm5, %v604_v13, 0.0 }
 0x1c1   :  { %v605_v60 = vmul.f32 %v583_v14, %v542_v50  ;;  %v609_v28 = vadd.f32 %v608_v47, %v607_v19 }
 0x1c2   :  { %v304_v16 = vadd.f32 %v300_v5, %v284_v61  ;;  %v591_v9 = vadd.f32 %v590_v12, %v589_v62 }
 0x1c3   :  { %v576_v20 = vpop.xlane.xlu2 %575  ;;  %v610_v36 = vsel %vm364_vm5, %v605_v60, 0.0 }
 0x1c4   :  { %v322_v21 = vsel %vm316_vm4, %v304_v16, 0.0  ;;  %v580_v23 = vmul.f32 0.03125, %v576_v20  ;;  %592 = vadd.xlane.f32.xlu2 %v591_v9  ;;  %v611_v30 = vadd.f32 %v610_v36, %v609_v28 }
 0x1c5   :  { %v387_v53 = vmul.f32 %v363_v15, %v322_v21  ;;  %v371_v24 = vsel %vm370_vm7, %v322_v21, 0.0 }
 0x1c6   :  { %v584_v22 = vadd.f32 1.0, %v580_v23  ;;  %v372_v18 = vadd.f32 %v371_v24, %v369_v3 }
 0x1c7   :  { %v393_v25 = vsel %vm370_vm7, %v387_v53, 0.0 }
 0x1c8   :  { %v606_v26 = vmul.f32 %v584_v22, %v543_v2  ;;  %373 = vadd.xlane.f32.xlu0 %v372_v18  ;;  %v394_v27 = vadd.f32 %v393_v25, %v392_v34 }
 0x1ca   :  { %395 = vadd.xlane.f32.xlu1 %v394_v27  ;;  %v612_v29 = vsel %vm370_vm7, %v606_v26, 0.0 }
 0x1cb   :  { %v613_v31 = vadd.f32 %v612_v29, %v611_v30 }
 0x1d0   :  { %614 = vadd.xlane.f32.xlu0 %v613_v31 }
 0x237   :  { %v593_v32 = vpop.xlane.xlu2 %592 }
 0x238   :  { %v594_v4 = vrot.slane %v593_v32, 4 }
 0x23a   :  { %v595_v33 = vadd.f32 %v594_v4, %v593_v32 }
 0x23b   :  { %v374_v45 = vpop.xlane.xlu0 %373 }
 0x23c   :  { %v375_v8 = vrot.slane %v374_v45, 4  ;;  %v596_v35 = vrot.slane %v595_v33, 2 }
 0x23d   :  { %v396_v37 = vpop.xlane.xlu1 %395 }
 0x23e   :  { %v376_v38 = vadd.f32 %v375_v8, %v374_v45  ;;  %v397_v39 = vrot.slane %v396_v37, 4  ;;  %v597_v42 = vadd.f32 %v596_v35, %v595_v33 }
 0x240   :  { %v377_v40 = vrot.slane %v376_v38, 2  ;;  %v398_v41 = vadd.f32 %v397_v39, %v396_v37  ;;  %v598_v52 = vrot.slane %v597_v42, 1 }
 0x242   :  { %v399_v43 = vrot.slane %v398_v41, 2  ;;  %v378_v44 = vadd.f32 %v377_v40, %v376_v38  ;;  %v599_v54 = vadd.f32 %v598_v52, %v597_v42 }
 0x243   :  { %v615_v46 = vpop.xlane.xlu0 %614 }
 0x244   :  { %v400_v50 = vadd.f32 %v399_v43, %v398_v41  ;;  %v616_v49 = vrot.slane %v615_v46, 4  ;;  %v379_v51 = vrot.slane %v378_v44, 1 }
 0x246   :  { %v617_v56 = vadd.f32 %v616_v49, %v615_v46  ;;  %v380_v57 = vadd.f32 %v379_v51, %v378_v44  ;;  %v401_v58 = vrot.slane %v400_v50, 1 }
 0x248   :  { %v618_v63 = vrot.slane %v617_v56, 2  ;;  %679 = vpush %v380_v57  ;;  %v402_v2 = vadd.f32 %v401_v58, %v400_v50 }
 0x24a   :  { %v619_v55 = vadd.f32 %v618_v63, %v617_v56  ;;  %681 = vpush %v402_v2 }
 0x24b   :  { %683 = vpush %v599_v54 }
 0x24c   :  { %v620_v5 = vrot.slane %v619_v55, 1 }
 0x24e   :  { %v621_v6 = vadd.f32 %v620_v5, %v619_v55 }
 0x250   :  { %685 = vpush %v621_v6 }
 0x279   :  { %s680_s6 = spop %679 }
 0x27a   :  { %v382_v0 = vstv %s680_s6 }
 0x27b   :  { %s682_s25 = spop %681 }
 0x27c   :  { %s684_s27 = spop %683  ;;  %v404_v1 = vstv %s682_s25 }
 0x27d   :  { %v601_v7 = vstv %s684_s27 }
 0x27e   :  { %v602_v10 = vadd.f32 %v601_v7, %v382_v0 }
 0x280   :  { %625 = vst [vmem:[#allocation2] sm:$0x1] %v602_v10 }
 0x281   :  { %s686_s12 = spop %685 }
 0x282   :  { %v623_v3 = vstv %s686_s12  ;;  %637 = dma.vmem_to_hbm [thread:$0]  %s633_s29, 16, %s635_s0, [#allocation3]  }
 0x283   :  { %v624_v11 = vadd.f32 %v623_v3, %v404_v1 }
 0x285   :  { %626 = vst [vmem:[#allocation4] sm:$0x1] %v624_v11 }
 0x286   :  { %648 = dma.vmem_to_hbm [thread:$0]  %s644_s9, 16, %s646_s11, [#allocation5]  }
 0x287   :  { %753 = dma.done.wait [#allocation3], 16  }
 0x288   :  { %754 = vsyncadd [#allocation3], 4294967280 }
 0x289   :  { %755 = dma.done.wait [#allocation5], 16  }
 0x28a   :  { %756 = vsyncadd [#allocation5], 4294967280 }
 0x28b   :  { %657 = vsyncpa [#allocation3], 1 }
 0x28c   :  { %658 = vsyncpa [#allocation5], 1 }

</bundles_post_ra>
